<compile_context>
chip_gen: v7x
topology: tpu7x:2x2x1
jax: 0.10.0
libtpu: 0.0.40
codegen_flags: <defaults>
</compile_context>

<pallas_src>
import functools

import jax
import jax.numpy as jnp
from jax.experimental import pallas as pl
from jax.experimental.pallas import tpu as pltpu

K = 3        # PyG TAGConv default number of propagation hops
LANE = 128   # TPU lane width: keep every minor dim a multiple of this


def _round_up(x, m):
    return (x + m - 1) // m * m


# ---------------------------------------------------------------------------
# Fused Pallas kernel: both TAGConv layers in one shot, Horner form.
#   layer(h) = sum_k A^k h W_k + b
#            = y_0 + A (y_1 + A (y_2 + A y_3)),   y_k = h W_k
#   out      = layer2(layer1(x))
# ---------------------------------------------------------------------------
def tag_fused_kernel(adj_hbm, x_ref, w1_ref, b1_ref, w2_ref, b2_ref,
                     o_ref, adj_vmem, dma_sem, *, chid_p, cout_p):
    # One-shot manual DMA of the adjacency (single-buffered: no 2x pipeline
    # copy of the biggest operand).  Overlap it with the layer-1 projection,
    # which does not need A.
    cp = pltpu.make_async_copy(adj_hbm, adj_vmem, dma_sem)
    cp.start()

    # layer-1 projection: x @ [W1_0 | ... | W1_K]  -> [N, (K+1)*Chid_p], f32
    y1 = jnp.dot(x_ref[...], w1_ref[...], preferred_element_type=jnp.float32)

    cp.wait()
    adj = adj_vmem[...]                              # [N, N] bf16, VMEM-resident

    def horner(y, c):
        # y: [N, (K+1)*c] f32, c a multiple of 128 (static lane-aligned slices)
        h = y[:, K * c:(K + 1) * c]
        for k in range(K - 1, -1, -1):
            h = y[:, k * c:(k + 1) * c] + jnp.dot(
                adj, h.astype(jnp.bfloat16), preferred_element_type=jnp.float32)
        return h

    # NOTE: padded (fake) rows end up equal to b1 after the bias add
    # (0 @ W + b = b).  This is harmless because padded adjacency columns are
    # zero and the wrapper slices out[:n, :cout]; do NOT add a row-wise
    # nonlinearity / normalization over padded rows without masking.
    h1 = horner(y1, chid_p) + b1_ref[...]            # conv1 output, f32

    # layer-2 projection + hops
    y2 = jnp.dot(h1.astype(jnp.bfloat16), w2_ref[...],
                 preferred_element_type=jnp.float32)
    out = horner(y2, cout_p) + b2_ref[...]           # conv2 output, f32
    o_ref[...] = out.astype(o_ref.dtype)


def tag_gnn_head(x_p, adj_p, w1, b1, w2, b2, n, cout):
    """Fused conv1+conv2.

    x_p:   [N_p, Cin_p] bf16, zero-padded node features
    adj_p: [N_p, N_p]   bf16, zero-padded normalized adjacency (A[dst, src])
    w*:    [K+1, Cin, Cout] f32 per-hop weights, b*: [Cout] f32
    Returns [n, cout] f32 (unpadded).
    """
    n_p, cin_p = x_p.shape
    chid = w1.shape[-1]
    chid_p = _round_up(chid, LANE)
    cout_p = _round_up(cout, LANE)

    def wide_w(w, ci_p, co_p):
        # [K+1, Ci, Co] -> [Ci_p, (K+1)*Co_p] with W_k in columns
        # [k*Co_p, (k+1)*Co_p): projection weights for the Horner form.
        kp1, ci, co = w.shape
        wp = jnp.pad(w, ((0, 0), (0, ci_p - ci), (0, co_p - co)))
        return jnp.transpose(wp, (1, 0, 2)).reshape(ci_p, kp1 * co_p).astype(jnp.bfloat16)

    w1_p = wide_w(w1, cin_p, chid_p)
    w2_p = wide_w(w2, chid_p, cout_p)
    b1_p = jnp.pad(b1, (0, chid_p - chid)).reshape(1, chid_p).astype(jnp.float32)
    b2_p = jnp.pad(b2, (0, cout_p - cout)).reshape(1, cout_p).astype(jnp.float32)

    # --- VMEM accounting: real resident set, not a blind multiplier --------
    adj_bytes = n_p * n_p * 2                                   # single-buffered scratch
    pipelined_in_bytes = (                                      # auto-pipelined -> 2x
        n_p * cin_p * 2
        + cin_p * (K + 1) * chid_p * 2
        + chid_p * (K + 1) * cout_p * 2
        + chid_p * 4 + cout_p * 4
    )
    out_bytes = n_p * cout_p * 4
    tmp_bytes = (                                               # in-kernel temporaries
        n_p * (K + 1) * chid_p * 4                              # y1 (f32)
        + n_p * (K + 1) * cout_p * 4                            # y2 (f32)
        + n_p * chid_p * (4 + 2)                                # h1 f32 + bf16 cast
        + n_p * max(chid_p, cout_p) * (4 + 2)                   # hop carry + bf16 cast
    )
    footprint = adj_bytes + 2 * pipelined_in_bytes + 2 * out_bytes + tmp_bytes

    try:
        phys_vmem = int(pltpu.get_tpu_info().vmem_capacity_bytes)
    except Exception:
        phys_vmem = 64 << 20                                    # safe on every generation
    vmem_limit = int(min(phys_vmem - (4 << 20),                 # compiler-scratch headroom
                         max(32 << 20, footprint + (8 << 20))))

    kernel = functools.partial(tag_fused_kernel, chid_p=chid_p, cout_p=cout_p)

    out = pl.pallas_call(
        kernel,
        out_shape=jax.ShapeDtypeStruct((n_p, cout_p), jnp.float32),
        # Single grid step: the whole problem is VMEM-resident at these sizes.
        grid=(1,),
        in_specs=[
            pl.BlockSpec(memory_space=pl.ANY),                        # adj: raw HBM ref
            pl.BlockSpec((n_p, cin_p), lambda i: (0, 0)),             # x
            pl.BlockSpec((cin_p, (K + 1) * chid_p), lambda i: (0, 0)),  # W1 wide
            pl.BlockSpec((1, chid_p), lambda i: (0, 0)),              # b1
            pl.BlockSpec((chid_p, (K + 1) * cout_p), lambda i: (0, 0)),  # W2 wide
            pl.BlockSpec((1, cout_p), lambda i: (0, 0)),              # b2
        ],
        out_specs=pl.BlockSpec((n_p, cout_p), lambda i: (0, 0)),
        scratch_shapes=[
            pltpu.VMEM((n_p, n_p), jnp.bfloat16),                     # adj, single copy
            pltpu.SemaphoreType.DMA(()),
        ],
        compiler_params=pltpu.CompilerParams(
            dimension_semantics=("arbitrary",),
            vmem_limit_bytes=vmem_limit,
        ),
    )(adj_p, x_p, w1_p, b1_p, w2_p, b2_p)

    return out[:n, :cout]


# ---------------------------------------------------------------------------
# gcn_norm as used by TAGConv (add_self_loops=False), densified.  Built
# directly into the padded buffer and cast to bf16 once (no extra full-N^2
# pad+cast round trip outside the kernel).
# ---------------------------------------------------------------------------
def gcn_norm_dense_padded(edge_index, num_nodes, num_nodes_padded):
    row, col = edge_index[0], edge_index[1]          # (source, target)
    ones = jnp.ones(row.shape[0], jnp.float32)
    deg = jnp.zeros((num_nodes,), jnp.float32).at[col].add(ones)
    dis = jnp.where(deg > 0, jax.lax.rsqrt(jnp.maximum(deg, 1e-12)), 0.0)
    norm = dis[row] * dis[col]
    adj = jnp.zeros((num_nodes_padded, num_nodes_padded), jnp.float32)
    # message flows source(row) -> target(col), summed at target:
    adj = adj.at[col, row].add(norm)
    return adj.astype(jnp.bfloat16)


def gcn_norm_dense(edge_index, num_nodes):
    row, col = edge_index[0], edge_index[1]
    ones = jnp.ones(row.shape[0], jnp.float32)
    deg = jnp.zeros((num_nodes,), jnp.float32).at[col].add(ones)
    dis = jnp.where(deg > 0, jax.lax.rsqrt(jnp.maximum(deg, 1e-12)), 0.0)
    norm = dis[row] * dis[col]
    return jnp.zeros((num_nodes, num_nodes), jnp.float32).at[col, row].add(norm)


# ---------------------------------------------------------------------------
# Forward pass matching TAG.forward semantics (post-BERT part).
# Note: the original chains conv1 -> conv2 with NO nonlinearity in between.
# ---------------------------------------------------------------------------
def tag_forward(x_add, x_del, edge_index, del_indexes, params):
    # to_homogeneous(): node features concatenated per node type (add, del)
    x = jnp.concatenate([x_add, x_del], axis=0)
    n, cin = x.shape
    n_p = _round_up(n, LANE)
    cin_p = _round_up(cin, LANE)

    # build padded bf16 operands directly (single cast, single write)
    x_p = jnp.zeros((n_p, cin_p), jnp.bfloat16).at[:n, :cin].set(
        x.astype(jnp.bfloat16))
    adj_p = gcn_norm_dense_padded(edge_index, n, n_p)

    cout = params["w2"].shape[-1]
    h = tag_gnn_head(x_p, adj_p,
                     params["w1"], params["b1"],
                     params["w2"], params["b2"],
                     n, cout)

    delnum = x_del.shape[0]
    h_del = h[-delnum:]                              # x = x[-delnum_nodes:]
    return jnp.take(h_del, del_indexes, axis=0)      # torch.index_select(x, 0, delIndexes)


# ---------------------------------------------------------------------------
# Pure-JAX f32 reference (for numerical validation of the bf16 kernel path).
# ---------------------------------------------------------------------------
def tag_reference(x_add, x_del, edge_index, del_indexes, params):
    x = jnp.concatenate([x_add, x_del], axis=0)
    n = x.shape[0]
    adj = gcn_norm_dense(edge_index, n)

    def conv(h, w, b):
        out = h @ w[0]
        hk = h
        for k in range(1, K + 1):
            hk = adj @ hk
            out = out + hk @ w[k]
        return out + b

    h = conv(x, params["w1"], params["b1"])
    h = conv(h, params["w2"], params["b2"])
    h_del = h[-x_del.shape[0]:]
    return jnp.take(h_del, del_indexes, axis=0)


if __name__ == "__main__":
    key = jax.random.PRNGKey(0)
    k_xa, k_xd, k_e, k_w1, k_b1, k_w2, k_b2 = jax.random.split(key, 7)

    # small synthetic shapes (BERT CLS dim 768 shrunk to 32 for the test)
    n_add, n_del = 8, 8
    in_channels, hidden_channels, out_channels = 32, 32, 16
    n_nodes = n_add + n_del

    x_add = jax.random.normal(k_xa, (n_add, in_channels), jnp.float32)
    x_del = jax.random.normal(k_xd, (n_del, in_channels), jnp.float32)

    # deterministic random graph (symmetric edge set between homogeneous nodes)
    n_edges = 40
    src = jax.random.randint(k_e, (n_edges,), 0, n_nodes)
    dst = jax.random.randint(jax.random.fold_in(k_e, 1), (n_edges,), 0, n_nodes)
    edge_index = jnp.stack(
        [jnp.concatenate([src, dst]), jnp.concatenate([dst, src])], axis=0
    ).astype(jnp.int32)

    params = {
        "w1": 0.1 * jax.random.normal(k_w1, (K + 1, in_channels, hidden_channels), jnp.float32),
        "b1": 0.1 * jax.random.normal(k_b1, (hidden_channels,), jnp.float32),
        "w2": 0.1 * jax.random.normal(k_w2, (K + 1, hidden_channels, out_channels), jnp.float32),
        "b2": 0.1 * jax.random.normal(k_b2, (out_channels,), jnp.float32),
    }

    del_indexes = jnp.array([0, 2, 5, 7], dtype=jnp.int32)

    out = tag_forward(x_add, x_del, edge_index, del_indexes, params)
    jax.block_until_ready(out)
    assert out.shape == (del_indexes.shape[0], out_channels)
    assert bool(jnp.all(jnp.isfinite(out)))

    # numerical sanity vs. the f32 reference (bf16 MXU path => loose tolerance)
    ref = tag_reference(x_add, x_del, edge_index, del_indexes, params)
    jax.block_until_ready(ref)
    err = float(jnp.max(jnp.abs(out - ref)))
    scale = float(jnp.maximum(1.0, jnp.max(jnp.abs(ref))))
    assert err / scale < 0.1, f"kernel vs reference mismatch: {err} (scale {scale})"

    print("KERNEL_OK")
</pallas_src>

<mosaic_0001>
module attributes {stable_mosaic.version = 11 : i64} {
  func.func @tag_fused_kernel(%arg0: i32, %arg1: memref<128x128xbf16, #tpu.memory_space<any>>, %arg2: memref<128x128xbf16, #tpu.memory_space<vmem>>, %arg3: memref<128x512xbf16, #tpu.memory_space<vmem>>, %arg4: memref<1x128xf32, #tpu.memory_space<vmem>>, %arg5: memref<128x512xbf16, #tpu.memory_space<vmem>>, %arg6: memref<1x128xf32, #tpu.memory_space<vmem>>, %arg7: memref<128x128xf32, #tpu.memory_space<vmem>>, %arg8: memref<128x128xbf16, #tpu.memory_space<vmem>>, %arg9: memref<!tpu.dma_semaphore, #tpu.memory_space<semaphore_mem>>) attributes {dimension_semantics = [#tpu.dimension_semantics<arbitrary>], iteration_bounds = array<i64: 1>, scalar_prefetch = 0 : i64, scratch_operands = 2 : i64, tpu.core_type = #tpu.core_type<tc>, window_params = [{}, {pipeline_mode = #tpu.pipeline_mode<synchronous>, transform_indices = @transform_1, window_bounds = array<i64: 128, 128>}, {pipeline_mode = #tpu.pipeline_mode<synchronous>, transform_indices = @transform_2, window_bounds = array<i64: 128, 512>}, {pipeline_mode = #tpu.pipeline_mode<synchronous>, transform_indices = @transform_3, window_bounds = array<i64: 1, 128>}, {pipeline_mode = #tpu.pipeline_mode<synchronous>, transform_indices = @transform_4, window_bounds = array<i64: 128, 512>}, {pipeline_mode = #tpu.pipeline_mode<synchronous>, transform_indices = @transform_5, window_bounds = array<i64: 1, 128>}, {pipeline_mode = #tpu.pipeline_mode<synchronous>, transform_indices = @transform_6, window_bounds = array<i64: 128, 128>}]} {
    tpu.enqueue_dma source(%arg1 : memref<128x128xbf16, #tpu.memory_space<any>>) target(%arg8 : memref<128x128xbf16, #tpu.memory_space<vmem>>) target_semaphore(%arg9 : memref<!tpu.dma_semaphore, #tpu.memory_space<semaphore_mem>>)
    %c0 = arith.constant 0 : index
    %c0_0 = arith.constant 0 : index
    %0 = vector.load %arg2[%c0, %c0_0] : memref<128x128xbf16, #tpu.memory_space<vmem>>, vector<128x128xbf16>
    %c0_1 = arith.constant 0 : index
    %c0_2 = arith.constant 0 : index
    %1 = vector.load %arg3[%c0_1, %c0_2] : memref<128x512xbf16, #tpu.memory_space<vmem>>, vector<128x512xbf16>
    %cst = arith.constant dense<0.000000e+00> : vector<128x512xf32>
    %2 = tpu.matmul %0, %1, %cst {dimension_numbers = #tpu.dot_dimension_numbers<[1], [0], [0], [1], [0, 0, 1, 1], [], []>} : vector<128x128xbf16>, vector<128x512xbf16>, vector<128x512xf32> -> vector<128x512xf32>
    tpu.wait_dma2 semaphore(%arg9 : memref<!tpu.dma_semaphore, #tpu.memory_space<semaphore_mem>>) src(%arg1 : memref<128x128xbf16, #tpu.memory_space<any>>) dst(%arg8 : memref<128x128xbf16, #tpu.memory_space<vmem>>)
    %c0_3 = arith.constant 0 : index
    %c0_4 = arith.constant 0 : index
    %3 = vector.load %arg8[%c0_3, %c0_4] : memref<128x128xbf16, #tpu.memory_space<vmem>>, vector<128x128xbf16>
    %4 = vector.extract_strided_slice %2 {offsets = [0, 384], sizes = [128, 128], strides = [1, 1]} : vector<128x512xf32> to vector<128x128xf32>
    %5 = vector.extract_strided_slice %2 {offsets = [0, 256], sizes = [128, 128], strides = [1, 1]} : vector<128x512xf32> to vector<128x128xf32>
    %6 = arith.truncf %4 : vector<128x128xf32> to vector<128x128xbf16>
    %cst_5 = arith.constant dense<0.000000e+00> : vector<128x128xf32>
    %7 = tpu.matmul %3, %6, %cst_5 {dimension_numbers = #tpu.dot_dimension_numbers<[1], [0], [0], [1], [0, 0, 1, 1], [], []>} : vector<128x128xbf16>, vector<128x128xbf16>, vector<128x128xf32> -> vector<128x128xf32>
    %8 = arith.addf %5, %7 : vector<128x128xf32>
    %9 = vector.extract_strided_slice %2 {offsets = [0, 128], sizes = [128, 128], strides = [1, 1]} : vector<128x512xf32> to vector<128x128xf32>
    %10 = arith.truncf %8 : vector<128x128xf32> to vector<128x128xbf16>
    %cst_6 = arith.constant dense<0.000000e+00> : vector<128x128xf32>
    %11 = tpu.matmul %3, %10, %cst_6 {dimension_numbers = #tpu.dot_dimension_numbers<[1], [0], [0], [1], [0, 0, 1, 1], [], []>} : vector<128x128xbf16>, vector<128x128xbf16>, vector<128x128xf32> -> vector<128x128xf32>
    %12 = arith.addf %9, %11 : vector<128x128xf32>
    %13 = vector.extract_strided_slice %2 {offsets = [0, 0], sizes = [128, 128], strides = [1, 1]} : vector<128x512xf32> to vector<128x128xf32>
    %14 = arith.truncf %12 : vector<128x128xf32> to vector<128x128xbf16>
    %cst_7 = arith.constant dense<0.000000e+00> : vector<128x128xf32>
    %15 = tpu.matmul %3, %14, %cst_7 {dimension_numbers = #tpu.dot_dimension_numbers<[1], [0], [0], [1], [0, 0, 1, 1], [], []>} : vector<128x128xbf16>, vector<128x128xbf16>, vector<128x128xf32> -> vector<128x128xf32>
    %16 = arith.addf %13, %15 : vector<128x128xf32>
    %c0_8 = arith.constant 0 : index
    %c0_9 = arith.constant 0 : index
    %17 = vector.load %arg4[%c0_8, %c0_9] : memref<1x128xf32, #tpu.memory_space<vmem>>, vector<1x128xf32>
    %18 = vector.broadcast %17 : vector<1x128xf32> to vector<128x128xf32>
    %19 = arith.addf %16, %18 : vector<128x128xf32>
    %20 = arith.truncf %19 : vector<128x128xf32> to vector<128x128xbf16>
    %c0_10 = arith.constant 0 : index
    %c0_11 = arith.constant 0 : index
    %21 = vector.load %arg5[%c0_10, %c0_11] : memref<128x512xbf16, #tpu.memory_space<vmem>>, vector<128x512xbf16>
    %cst_12 = arith.constant dense<0.000000e+00> : vector<128x512xf32>
    %22 = tpu.matmul %20, %21, %cst_12 {dimension_numbers = #tpu.dot_dimension_numbers<[1], [0], [0], [1], [0, 0, 1, 1], [], []>} : vector<128x128xbf16>, vector<128x512xbf16>, vector<128x512xf32> -> vector<128x512xf32>
    %23 = vector.extract_strided_slice %22 {offsets = [0, 384], sizes = [128, 128], strides = [1, 1]} : vector<128x512xf32> to vector<128x128xf32>
    %24 = vector.extract_strided_slice %22 {offsets = [0, 256], sizes = [128, 128], strides = [1, 1]} : vector<128x512xf32> to vector<128x128xf32>
    %25 = arith.truncf %23 : vector<128x128xf32> to vector<128x128xbf16>
    %cst_13 = arith.constant dense<0.000000e+00> : vector<128x128xf32>
    %26 = tpu.matmul %3, %25, %cst_13 {dimension_numbers = #tpu.dot_dimension_numbers<[1], [0], [0], [1], [0, 0, 1, 1], [], []>} : vector<128x128xbf16>, vector<128x128xbf16>, vector<128x128xf32> -> vector<128x128xf32>
    %27 = arith.addf %24, %26 : vector<128x128xf32>
    %28 = vector.extract_strided_slice %22 {offsets = [0, 128], sizes = [128, 128], strides = [1, 1]} : vector<128x512xf32> to vector<128x128xf32>
    %29 = arith.truncf %27 : vector<128x128xf32> to vector<128x128xbf16>
    %cst_14 = arith.constant dense<0.000000e+00> : vector<128x128xf32>
    %30 = tpu.matmul %3, %29, %cst_14 {dimension_numbers = #tpu.dot_dimension_numbers<[1], [0], [0], [1], [0, 0, 1, 1], [], []>} : vector<128x128xbf16>, vector<128x128xbf16>, vector<128x128xf32> -> vector<128x128xf32>
    %31 = arith.addf %28, %30 : vector<128x128xf32>
    %32 = vector.extract_strided_slice %22 {offsets = [0, 0], sizes = [128, 128], strides = [1, 1]} : vector<128x512xf32> to vector<128x128xf32>
    %33 = arith.truncf %31 : vector<128x128xf32> to vector<128x128xbf16>
    %cst_15 = arith.constant dense<0.000000e+00> : vector<128x128xf32>
    %34 = tpu.matmul %3, %33, %cst_15 {dimension_numbers = #tpu.dot_dimension_numbers<[1], [0], [0], [1], [0, 0, 1, 1], [], []>} : vector<128x128xbf16>, vector<128x128xbf16>, vector<128x128xf32> -> vector<128x128xf32>
    %35 = arith.addf %32, %34 : vector<128x128xf32>
    %c0_16 = arith.constant 0 : index
    %c0_17 = arith.constant 0 : index
    %36 = vector.load %arg6[%c0_16, %c0_17] : memref<1x128xf32, #tpu.memory_space<vmem>>, vector<1x128xf32>
    %37 = vector.broadcast %36 : vector<1x128xf32> to vector<128x128xf32>
    %38 = arith.addf %35, %37 : vector<128x128xf32>
    %c0_18 = arith.constant 0 : index
    %c0_19 = arith.constant 0 : index
    %39 = vector.load %arg7[%c0_18, %c0_19] : memref<128x128xf32, #tpu.memory_space<vmem>>, vector<128x128xf32>
    tpu.vector_store %arg7[%c0_18, %c0_19], %38 {strides = array<i32>} : memref<128x128xf32, #tpu.memory_space<vmem>>, vector<128x128xf32>,
    return
  }
  func.func @transform_1(%arg0: i32) -> (i32, i32) {
    %c0_i32 = arith.constant 0 : i32
    %c0_i32_0 = arith.constant 0 : i32
    %c0_i32_1 = arith.constant 0 : i32
    return %c0_i32, %c0_i32_0 : i32, i32
  }
  func.func @transform_2(%arg0: i32) -> (i32, i32) {
    %c0_i32 = arith.constant 0 : i32
    %c0_i32_0 = arith.constant 0 : i32
    %c0_i32_1 = arith.constant 0 : i32
    return %c0_i32, %c0_i32_0 : i32, i32
  }
  func.func @transform_3(%arg0: i32) -> (i32, i32) {
    %c0_i32 = arith.constant 0 : i32
    %c0_i32_0 = arith.constant 0 : i32
    %c0_i32_1 = arith.constant 0 : i32
    return %c0_i32, %c0_i32_0 : i32, i32
  }
  func.func @transform_4(%arg0: i32) -> (i32, i32) {
    %c0_i32 = arith.constant 0 : i32
    %c0_i32_0 = arith.constant 0 : i32
    %c0_i32_1 = arith.constant 0 : i32
    return %c0_i32, %c0_i32_0 : i32, i32
  }
  func.func @transform_5(%arg0: i32) -> (i32, i32) {
    %c0_i32 = arith.constant 0 : i32
    %c0_i32_0 = arith.constant 0 : i32
    %c0_i32_1 = arith.constant 0 : i32
    return %c0_i32, %c0_i32_0 : i32, i32
  }
  func.func @transform_6(%arg0: i32) -> (i32, i32) {
    %c0_i32 = arith.constant 0 : i32
    %c0_i32_0 = arith.constant 0 : i32
    %c0_i32_1 = arith.constant 0 : i32
    return %c0_i32, %c0_i32_0 : i32, i32
  }
}

</mosaic_0001>

<bundles_post_ra>
// kernel: tpu_custom_call.1
= control target key start
LH: loop header
LB: loop body
LE: loop exit
PB: predicated region body
PF: predicated region fallthrough
CT: control target
= control target key end

     0   :  { %11 = vsyncpa [#allocation5], 0  ;;  %s2937_s0 = inlined_call_operand.hbm [shape: bf16[128,128], index: 0, kind: input, shape index: {}]   ;;  %s2938_s1 = inlined_call_operand.hbm [shape: bf16[128,128], index: 1, kind: input, shape index: {}]   ;;  %s2939_s2 = inlined_call_operand.hbm [shape: bf16[128,512], index: 2, kind: input, shape index: {}]   ;;  %s2940_s3 = inlined_call_operand.vmem [shape: f32[1,128], index: 3, kind: input, shape index: {}]   ;;  %s2941_s4 = inlined_call_operand.hbm [shape: bf16[128,512], index: 4, kind: input, shape index: {}]   ;;  %s2942_s5 = inlined_call_operand.vmem [shape: f32[1,128], index: 5, kind: input, shape index: {}]   ;;  %s2943_s6 = inlined_call_operand.hbm [shape: f32[128,128], index: 6, kind: output, shape index: {}]  }
   0x1   :  { %12 = vsyncpa [#allocation8], 0 }
   0x2   :  { %13 = vsyncpa [#allocation6], 0  ;;  %s2404_s21 = smov [#allocation7]   ;;  %s2286_s25 = scalar_lea.hbm %s2939_s2, 4096 }
   0x3   :  { %s31_s22 = sshll.u32 %s2404_s21, 4  ;;  %p2287_p0 = scmp.ne.s32.totalorder %s2939_s2, %s2286_s25  ;;  %s32_s22 = int_to_ptr.vmem [resolvable:$true] %s31_s22 }
   0x4   :  { %p2290_p1 = scmp.lt.u32.totalorder %s2286_s25, %s2939_s2 }
   0x6   :  { %p2292_p2 = pnand %p2290_p1, %p2287_p0 }
   0x8   :  { %2295 = shalt.err (!%p2292_p2)
}
   0x9   :  { %s2296_s30 = scalar_lea.vmem %s32_s22, 4096  ;;  %p2301_p4 = scmp.lt.s32.totalorder %s32_s22, %s32_s22 }
   0xa   :  { %p2297_p3 = scmp.ne.s32.totalorder %s32_s22, %s2296_s30  ;;  %p2302_p5 = scmp.lt.s32.totalorder %s2296_s30, %s2296_s30 }
   0xc   :  { %p2303_p6 = por %p2302_p5, %p2301_p4 }
   0xe   :  { %p2304_p7 = pnand %p2303_p6, %p2297_p3 }
  0x10   :  { %2307 = shalt.err (!%p2304_p7)
}
  0x11   :  { %s2405_s7 = smov 256   ;;  %s2406_s8 = smov 16  }
  0x12   :  { %37 = dma.hbm_to_vmem [thread:$0]  %s2939_s2, 4096, %s32_s22, [#allocation8], %s2405_s7, %s2405_s7, %s2406_s8  }
  0x13   :  { %s2407_s11 = smov [#allocation4]   ;;  %s2308_s15 = scalar_lea.hbm %s2938_s1, 1024 }
  0x14   :  { %s19_s12 = sshll.u32 %s2407_s11, 4  ;;  %p2309_p8 = scmp.ne.s32.totalorder %s2938_s1, %s2308_s15  ;;  %s20_s12 = int_to_ptr.vmem [resolvable:$true] %s19_s12 }
  0x15   :  { %p2312_p9 = scmp.lt.u32.totalorder %s2308_s15, %s2938_s1 }
  0x17   :  { %p2314_p10 = pnand %p2312_p9, %p2309_p8 }
  0x19   :  { %2317 = shalt.err (!%p2314_p10)
}
  0x1a   :  { %s2318_s20 = scalar_lea.vmem %s20_s12, 1024  ;;  %p2323_p12 = scmp.lt.s32.totalorder %s20_s12, %s20_s12 }
  0x1b   :  { %p2319_p11 = scmp.ne.s32.totalorder %s20_s12, %s2318_s20  ;;  %p2324_p13 = scmp.lt.s32.totalorder %s2318_s20, %s2318_s20 }
  0x1d   :  { %p2325_p0 = por %p2324_p13, %p2323_p12 }
  0x1f   :  { %p2326_p1 = pnand %p2325_p0, %p2319_p11 }
  0x21   :  { %2329 = shalt.err (!%p2326_p1)
}
  0x22   :  { %s2408_s2 = smov 64   ;;  %s2409_s21 = smov 4  }
  0x23   :  { %25 = dma.hbm_to_vmem [thread:$0]  %s2938_s1, 1024, %s20_s12, [#allocation5], %s2408_s2, %s2408_s2, %s2409_s21  }
  0x24   :  { %s2410_s24 = smov [#allocation9]   ;;  %s2330_s28 = scalar_lea.hbm %s2941_s4, 4096 }
  0x25   :  { %s45_s25 = sshll.u32 %s2410_s24, 4  ;;  %p2331_p2 = scmp.ne.s32.totalorder %s2941_s4, %s2330_s28  ;;  %s46_s25 = int_to_ptr.vmem [resolvable:$true] %s45_s25 }
  0x26   :  { %p2334_p3 = scmp.lt.u32.totalorder %s2330_s28, %s2941_s4 }
  0x28   :  { %p2336_p4 = pnand %p2334_p3, %p2331_p2 }
  0x2a   :  { %2339 = shalt.err (!%p2336_p4)
}
  0x2b   :  { %s2340_s11 = scalar_lea.vmem %s46_s25, 4096  ;;  %p2345_p6 = scmp.lt.s32.totalorder %s46_s25, %s46_s25 }
  0x2c   :  { %p2341_p5 = scmp.ne.s32.totalorder %s46_s25, %s2340_s11  ;;  %p2346_p7 = scmp.lt.s32.totalorder %s2340_s11, %s2340_s11 }
  0x2e   :  { %p2347_p8 = por %p2346_p7, %p2345_p6 }
  0x30   :  { %p2348_p9 = pnand %p2347_p8, %p2341_p5 }
  0x32   :  { %2351 = shalt.err (!%p2348_p9)
}
  0x33   :  { %51 = dma.hbm_to_vmem [thread:$0]  %s2941_s4, 4096, %s46_s25, [#allocation8], %s2405_s7, %s2405_s7, %s2406_s8  }
  0x34   :  { %2396 = dma.done.wait [#allocation5], 1024  }
  0x35   :  { %2397 = vsyncadd [#allocation5], 4294966272 }
  0x36   :  { %2398 = dma.done.wait [#allocation8], 8192  }
  0x37   :  { %2399 = vsyncadd [#allocation8], 4294959104  ;;  %v2944_v0 = vmov 0   ;;  %v2182_v1 = vld [vmem:[#allocation7 + $0x4] ss:$16 sps:$4 sm:$0xff]   ;;  %v2231_v34 = vld [vmem:[#allocation4 + $0x8] sm:$0xff]  }
  0x38   :  { %363 = vmatprep.mubr.bf16.mxu0 %v2944_v0  ;;  %476 = vmatprep.mubr.bf16.mxu1 %v2944_v0  ;;  %v2184_v2 = vld [vmem:[#allocation7 + $0xc] ss:$16 sps:$4 sm:$0xff]   ;;  %v2186_v3 = vld [vmem:[#allocation7] ss:$16 sps:$4 sm:$0xff]   ;;  %v2187_v4 = vld [vmem:[#allocation7 + $0x8] ss:$16 sps:$4 sm:$0xff]  }
  0x39   :  { %331 = vmatprep.subr.bf16.mxu0 %v2182_v1  ;;  %444 = vmatprep.subr.bf16.mxu1 %v2184_v2  ;;  %v2188_v5 = vld [vmem:[#allocation7 + $0x24] ss:$16 sps:$4 sm:$0xff]   ;;  %v2190_v6 = vld [vmem:[#allocation7 + $0x2c] ss:$16 sps:$4 sm:$0xff]   ;;  %v2192_v7 = vld [vmem:[#allocation7 + $0x20] ss:$16 sps:$4 sm:$0xff]  }
  0x3a   :  { %332 = vmatpush1.bf16.msra.mxu0 %v2186_v3  ;;  %445 = vmatpush1.bf16.msra.mxu1 %v2187_v4  ;;  %v2193_v8 = vld [vmem:[#allocation7 + $0x28] ss:$16 sps:$4 sm:$0xff]   ;;  %v2194_v9 = vld [vmem:[#allocation7 + $0x44] ss:$16 sps:$4 sm:$0xff]   ;;  %v2196_v10 = vld [vmem:[#allocation7 + $0x4c] ss:$16 sps:$4 sm:$0xff]  }
  0x3b   :  { %333 = vmatprep.subr.bf16.mxu0 %v2188_v5  ;;  %446 = vmatprep.subr.bf16.mxu1 %v2190_v6  ;;  %v2198_v11 = vld [vmem:[#allocation7 + $0x40] ss:$16 sps:$4 sm:$0xff]   ;;  %v2199_v12 = vld [vmem:[#allocation7 + $0x48] ss:$16 sps:$4 sm:$0xff]   ;;  %v2200_v13 = vld [vmem:[#allocation7 + $0x64] ss:$16 sps:$4 sm:$0xff]  }
  0x3c   :  { %v2202_v14 = vld [vmem:[#allocation7 + $0x6c] ss:$16 sps:$4 sm:$0xff]   ;;  %v2204_v15 = vld [vmem:[#allocation7 + $0x60] ss:$16 sps:$4 sm:$0xff]   ;;  %v2205_v16 = vld [vmem:[#allocation7 + $0x68] ss:$16 sps:$4 sm:$0xff]  }
  0x3d   :  { %v2206_v17 = vld [vmem:[#allocation7 + $0x84] ss:$16 sps:$4 sm:$0xff]   ;;  %v2208_v18 = vld [vmem:[#allocation7 + $0x8c] ss:$16 sps:$4 sm:$0xff]   ;;  %v2210_v19 = vld [vmem:[#allocation7 + $0x80] ss:$16 sps:$4 sm:$0xff]  }
  0x3e   :  { %334 = vmatpush1.bf16.msra.mxu0 %v2192_v7  ;;  %447 = vmatpush1.bf16.msra.mxu1 %v2193_v8  ;;  %v2211_v20 = vld [vmem:[#allocation7 + $0x88] ss:$16 sps:$4 sm:$0xff]   ;;  %v2212_v21 = vld [vmem:[#allocation7 + $0xa4] ss:$16 sps:$4 sm:$0xff]   ;;  %v2214_v22 = vld [vmem:[#allocation7 + $0xac] ss:$16 sps:$4 sm:$0xff]  }
  0x3f   :  { %335 = vmatprep.subr.bf16.mxu0 %v2194_v9  ;;  %448 = vmatprep.subr.bf16.mxu1 %v2196_v10  ;;  %v2216_v23 = vld [vmem:[#allocation7 + $0xa0] ss:$16 sps:$4 sm:$0xff]   ;;  %v2217_v24 = vld [vmem:[#allocation7 + $0xa8] ss:$16 sps:$4 sm:$0xff]   ;;  %v2218_v25 = vld [vmem:[#allocation7 + $0xc4] ss:$16 sps:$4 sm:$0xff]  }
  0x40   :  { %v2220_v26 = vld [vmem:[#allocation7 + $0xcc] ss:$16 sps:$4 sm:$0xff]   ;;  %v2222_v27 = vld [vmem:[#allocation7 + $0xc0] ss:$16 sps:$4 sm:$0xff]   ;;  %v2223_v28 = vld [vmem:[#allocation7 + $0xc8] ss:$16 sps:$4 sm:$0xff]  }
  0x41   :  { %v2224_v29 = vld [vmem:[#allocation7 + $0xe4] ss:$16 sps:$4 sm:$0xff]   ;;  %v2226_v30 = vld [vmem:[#allocation7 + $0xec] ss:$16 sps:$4 sm:$0xff]   ;;  %v2228_v31 = vld [vmem:[#allocation7 + $0xe0] ss:$16 sps:$4 sm:$0xff]  }
  0x42   :  { %336 = vmatpush1.bf16.msra.mxu0 %v2198_v11  ;;  %449 = vmatpush1.bf16.msra.mxu1 %v2199_v12  ;;  %v2229_v32 = vld [vmem:[#allocation7 + $0xe8] ss:$16 sps:$4 sm:$0xff]   ;;  %v2230_v33 = vld [vmem:[#allocation4] sm:$0xff]   ;;  %v2232_v35 = vld [vmem:[#allocation4 + $0x10] sm:$0xff]   ;;  %s2412_s4 = smov [#allocation2]   ;;  %s2352_s14 = scalar_lea.hbm %s2937_s0, 1024 }
  0x43   :  { %337 = vmatprep.subr.bf16.mxu0 %v2200_v13  ;;  %450 = vmatprep.subr.bf16.mxu1 %v2202_v14  ;;  %v2233_v36 = vld [vmem:[#allocation4 + $0x18] sm:$0xff]   ;;  %v2234_v37 = vld [vmem:[#allocation4 + $0x20] sm:$0xff]   ;;  %v2235_v38 = vld [vmem:[#allocation4 + $0x28] sm:$0xff]   ;;  %s71_s7 = sshll.u32 %s2412_s4, 4  ;;  %p2353_p10 = scmp.ne.s32.totalorder %s2937_s0, %s2352_s14  ;;  %s72_s7 = int_to_ptr.vmem [resolvable:$true] %s71_s7 }
  0x44   :  { %v2236_v39 = vld [vmem:[#allocation4 + $0x30] sm:$0xff]   ;;  %v2237_v40 = vld [vmem:[#allocation4 + $0x38] sm:$0xff]   ;;  %p2356_p11 = scmp.lt.u32.totalorder %s2352_s14, %s2937_s0 }
  0x46   :  { %338 = vmatpush1.bf16.msra.mxu0 %v2204_v15  ;;  %451 = vmatpush1.bf16.msra.mxu1 %v2205_v16  ;;  %p2358_p12 = pnand %p2356_p11, %p2353_p10 }
  0x47   :  { %339 = vmatprep.subr.bf16.mxu0 %v2206_v17  ;;  %452 = vmatprep.subr.bf16.mxu1 %v2208_v18 }
  0x4a   :  { %340 = vmatpush1.bf16.msra.mxu0 %v2210_v19  ;;  %453 = vmatpush1.bf16.msra.mxu1 %v2211_v20 }
  0x4b   :  { %341 = vmatprep.subr.bf16.mxu0 %v2212_v21  ;;  %454 = vmatprep.subr.bf16.mxu1 %v2214_v22 }
  0x4e   :  { %342 = vmatpush1.bf16.msra.mxu0 %v2216_v23  ;;  %455 = vmatpush1.bf16.msra.mxu1 %v2217_v24 }
  0x4f   :  { %343 = vmatprep.subr.bf16.mxu0 %v2218_v25  ;;  %456 = vmatprep.subr.bf16.mxu1 %v2220_v26 }
  0x52   :  { %344 = vmatpush1.bf16.msra.mxu0 %v2222_v27  ;;  %457 = vmatpush1.bf16.msra.mxu1 %v2223_v28 }
  0x53   :  { %345 = vmatprep.subr.bf16.mxu0 %v2224_v29  ;;  %458 = vmatprep.subr.bf16.mxu1 %v2226_v30 }
  0x56   :  { %346 = vmatpush1.bf16.msra.mxu0 %v2228_v31  ;;  %459 = vmatpush1.bf16.msra.mxu1 %v2229_v32 }
  0x59   :  { %364 = vmatmul.mubr.bf16.vlgmr.msra.gmra.mrb[0].mxu0 %v2230_v33  ;;  %477 = vmatmul.mubr.bf16.vlgmr.msra.gmra.mrb[0].mxu1 %v2230_v33 }
  0x5a   :  { %373 = vmatprep.mubr.bf16.mxu0 %v2944_v0  ;;  %486 = vmatprep.mubr.bf16.mxu1 %v2944_v0 }
  0x61   :  { %374 = vmatmul.mubr.bf16.gmra.mrb[4].mxu0 %v2231_v34  ;;  %487 = vmatmul.mubr.bf16.gmra.mrb[4].mxu1 %v2231_v34 }
  0x62   :  { %383 = vmatprep.mubr.bf16.mxu0 %v2944_v0  ;;  %496 = vmatprep.mubr.bf16.mxu1 %v2944_v0 }
  0x69   :  { %384 = vmatmul.mubr.bf16.gmra.mrb[8].mxu0 %v2232_v35  ;;  %497 = vmatmul.mubr.bf16.gmra.mrb[8].mxu1 %v2232_v35 }
  0x6a   :  { %393 = vmatprep.mubr.bf16.mxu0 %v2944_v0  ;;  %506 = vmatprep.mubr.bf16.mxu1 %v2944_v0 }
  0x71   :  { %394 = vmatmul.mubr.bf16.gmra.mrb[12].mxu0 %v2233_v36  ;;  %507 = vmatmul.mubr.bf16.gmra.mrb[12].mxu1 %v2233_v36 }
  0x72   :  { %403 = vmatprep.mubr.bf16.mxu0 %v2944_v0  ;;  %516 = vmatprep.mubr.bf16.mxu1 %v2944_v0 }
  0x79   :  { %404 = vmatmul.mubr.bf16.gmra.mrb[16].mxu0 %v2234_v37  ;;  %517 = vmatmul.mubr.bf16.gmra.mrb[16].mxu1 %v2234_v37 }
  0x7a   :  { %413 = vmatprep.mubr.bf16.mxu0 %v2944_v0  ;;  %526 = vmatprep.mubr.bf16.mxu1 %v2944_v0 }
  0x81   :  { %414 = vmatmul.mubr.bf16.gmra.mrb[20].mxu0 %v2235_v38  ;;  %527 = vmatmul.mubr.bf16.gmra.mrb[20].mxu1 %v2235_v38 }
  0x82   :  { %423 = vmatprep.mubr.bf16.mxu0 %v2944_v0  ;;  %536 = vmatprep.mubr.bf16.mxu1 %v2944_v0 }
  0x89   :  { %424 = vmatmul.mubr.bf16.gmra.mrb[24].mxu0 %v2236_v39  ;;  %537 = vmatmul.mubr.bf16.gmra.mrb[24].mxu1 %v2236_v39 }
  0x8a   :  { %433 = vmatprep.mubr.bf16.mxu0 %v2944_v0  ;;  %546 = vmatprep.mubr.bf16.mxu1 %v2944_v0 }
  0x91   :  { %434 = vmatmul.mubr.bf16.gmra.mrb[28].mxu0 %v2237_v40  ;;  %547 = vmatmul.mubr.bf16.gmra.mrb[28].mxu1 %v2237_v40 }
  0x92   :  { %2361 = shalt.err (!%p2358_p12)  }
  0x93   :  { %s2362_s19 = scalar_lea.vmem %s72_s7, 1024  ;;  %p2367_p0 = scmp.lt.s32.totalorder %s72_s7, %s72_s7 }
  0x94   :  { %p2363_p13 = scmp.ne.s32.totalorder %s72_s7, %s2362_s19  ;;  %p2368_p1 = scmp.lt.s32.totalorder %s2362_s19, %s2362_s19 }
  0x96   :  { %p2369_p2 = por %p2368_p1, %p2367_p0 }
  0x98   :  { %p2370_p3 = pnand %p2369_p2, %p2363_p13 }
  0x9a   :  { %2373 = shalt.err (!%p2370_p3)  }
  0x9b   :  { %74 = dma.hbm_to_vmem [thread:$0]  %s2937_s0, 1024, %s72_s7, [#allocation3] }
 0x12c   :  { %v2521_v41 = vpop.f32.mrb[0].mxu0  ;;  %v2523_v42 = vpop.f32.mrb[0].mxu1 }
 0x12d   :  { %v2525_v43 = vpop.f32.mrb[1].mxu0  ;;  %v480_v44 = vpop.f32.mrb[1].mxu1 }
 0x12e   :  { %v2527_v45 = vpop.f32.mrb[2].mxu0  ;;  %v2529_v46 = vpop.f32.mrb[2].mxu1 }
 0x12f   :  { %v2531_v47 = vpop.f32.mrb[3].mxu0  ;;  %v484_v48 = vpop.f32.mrb[3].mxu1 }
 0x134   :  { %v2533_v49 = vpop.f32.mrb[4].mxu0  ;;  %v2535_v50 = vpop.f32.mrb[4].mxu1 }
 0x135   :  { %v2537_v51 = vpop.f32.mrb[5].mxu0  ;;  %v490_v52 = vpop.f32.mrb[5].mxu1 }
 0x136   :  { %v2539_v53 = vpop.f32.mrb[6].mxu0  ;;  %v2541_v54 = vpop.f32.mrb[6].mxu1 }
 0x137   :  { %v2543_v55 = vpop.f32.mrb[7].mxu0  ;;  %v494_v56 = vpop.f32.mrb[7].mxu1 }
 0x13c   :  { %v2545_v57 = vpop.f32.mrb[8].mxu0  ;;  %v2547_v58 = vpop.f32.mrb[8].mxu1 }
 0x13d   :  { %v2549_v59 = vpop.f32.mrb[9].mxu0  ;;  %v500_v60 = vpop.f32.mrb[9].mxu1 }
 0x13e   :  { %v2551_v61 = vpop.f32.mrb[10].mxu0  ;;  %v2553_v62 = vpop.f32.mrb[10].mxu1 }
 0x13f   :  { %v2555_v63 = vpop.f32.mrb[11].mxu0  ;;  %v504_v1 = vpop.f32.mrb[11].mxu1 }
 0x144   :  { %v2557_v2 = vpop.f32.mrb[12].mxu0  ;;  %v2559_v3 = vpop.f32.mrb[12].mxu1 }
 0x145   :  { %v2561_v4 = vpop.f32.mrb[13].mxu0  ;;  %v510_v5 = vpop.f32.mrb[13].mxu1 }
 0x146   :  { %v2563_v6 = vpop.f32.mrb[14].mxu0  ;;  %v2565_v7 = vpop.f32.mrb[14].mxu1 }
 0x147   :  { %v2567_v8 = vpop.f32.mrb[15].mxu0  ;;  %v514_v9 = vpop.f32.mrb[15].mxu1 }
 0x14c   :  { %v2569_v10 = vpop.f32.mrb[16].mxu0  ;;  %v2571_v11 = vpop.f32.mrb[16].mxu1 }
 0x14d   :  { %v2573_v12 = vpop.f32.mrb[17].mxu0  ;;  %v520_v13 = vpop.f32.mrb[17].mxu1 }
 0x14e   :  { %v2575_v14 = vpop.f32.mrb[18].mxu0  ;;  %v2577_v15 = vpop.f32.mrb[18].mxu1 }
 0x14f   :  { %2948 = vst [vmem:[#allocation19_spill] sm:$0xff] %v2575_v14  ;;  %v2579_v16 = vpop.f32.mrb[19].mxu0  ;;  %v524_v17 = vpop.f32.mrb[19].mxu1 }
 0x154   :  { %v2581_v18 = vpop.f32.mrb[20].mxu0  ;;  %v2583_v19 = vpop.f32.mrb[20].mxu1 }
 0x155   :  { %v2585_v20 = vpop.f32.mrb[21].mxu0  ;;  %v530_v21 = vpop.f32.mrb[21].mxu1 }
 0x156   :  { %v2587_v22 = vpop.f32.mrb[22].mxu0  ;;  %v2589_v23 = vpop.f32.mrb[22].mxu1 }
 0x157   :  { %2949 = vst [vmem:[#allocation20_spill] sm:$0xff] %v2587_v22  ;;  %v2591_v24 = vpop.f32.mrb[23].mxu0  ;;  %v534_v25 = vpop.f32.mrb[23].mxu1 }
 0x15c   :  { %v2593_v26 = vpop.f32.mrb[24].mxu0  ;;  %v2595_v27 = vpop.f32.mrb[24].mxu1 }
 0x15d   :  { %2950 = vst [vmem:[#allocation21_spill] sm:$0xff] %v2593_v26  ;;  %v2597_v28 = vpop.f32.mrb[25].mxu0  ;;  %v540_v29 = vpop.f32.mrb[25].mxu1  ;;  %v570_v26 = vpack.c.bf16 %v494_v56, %v490_v52 }
 0x15e   :  { %v2599_v30 = vpop.f32.mrb[26].mxu0  ;;  %v2601_v31 = vpop.f32.mrb[26].mxu1 }
 0x15f   :  { %2951 = vst [vmem:[#allocation22_spill] sm:$0xff] %v2599_v30  ;;  %v2603_v32 = vpop.f32.mrb[27].mxu0  ;;  %v544_v33 = vpop.f32.mrb[27].mxu1  ;;  %v569_v30 = vpack.c.bf16 %v484_v48, %v480_v44 }
 0x164   :  { %v2605_v34 = vpop.f32.mrb[28].mxu0  ;;  %v2607_v35 = vpop.f32.mrb[28].mxu1 }
 0x165   :  { %2952 = vst [vmem:[#allocation23_spill] sm:$0xff] %v2605_v34  ;;  %v2609_v36 = vpop.f32.mrb[29].mxu0  ;;  %v550_v37 = vpop.f32.mrb[29].mxu1 }
 0x166   :  { %v2611_v38 = vpop.f32.mrb[30].mxu0  ;;  %v2613_v39 = vpop.f32.mrb[30].mxu1 }
 0x167   :  { %2953 = vst [vmem:[#allocation24_spill] sm:$0xff] %v2611_v38  ;;  %v2615_v40 = vpop.f32.mrb[31].mxu0  ;;  %v554_v0 = vpop.f32.mrb[31].mxu1 }
 0x168   :  { %2400 = dma.done.wait [#allocation3], 1024 }
 0x169   :  { %2401 = vsyncadd [#allocation3], 4294966272  ;;  %1978 = vmatprep.subr.bf16.mxu0 %v569_v30  ;;  %v571_v34 = vpack.c.bf16 %v504_v1, %v500_v60  ;;  %v2617_v14 = vld [vmem:[#allocation2] sm:$0xff]  ;;  %v572_v22 = vpack.c.bf16 %v514_v9, %v510_v5  ;;  %v573_v38 = vpack.c.bf16 %v524_v17, %v520_v13  ;;  %v574_v44 = vpack.c.bf16 %v534_v25, %v530_v21  ;;  %v2621_v56 = vld [vmem:[#allocation2 + $0x8] sm:$0xff] }
 0x16a   :  { %1979 = vmatpush3.bf16.msra.mxu0 %v569_v30  ;;  %2954 = vst [vmem:[#allocation25_spill] sm:$0xff] %v2617_v14  ;;  %1994 = vmatprep.mubr.bf16.mxu0 %v2617_v14  ;;  %v575_v48 = vpack.c.bf16 %v544_v33, %v540_v29  ;;  %v576_v52 = vpack.c.bf16 %v554_v0, %v550_v37  ;;  %v2623_v60 = vld [vmem:[#allocation2 + $0x10] sm:$0xff]  ;;  %v2627_v1 = vld [vmem:[#allocation2 + $0x18] sm:$0xff]  ;;  %v2629_v5 = vld [vmem:[#allocation2 + $0x20] sm:$0xff] }
 0x16b   :  { %1980 = vmatprep.subr.bf16.mxu0 %v570_v26  ;;  %2026 = vmatprep.mubr.bf16.mxu1 %v2617_v14  ;;  %v2633_v0 = vld [vmem:[#allocation2 + $0x28] sm:$0xff]  ;;  %v2635_v9 = vld [vmem:[#allocation2 + $0x30] sm:$0xff]  ;;  %v2639_v13 = vld [vmem:[#allocation2 + $0x38] sm:$0xff] }
 0x16e   :  { %1981 = vmatpush3.bf16.msra.mxu0 %v570_v26 }
 0x16f   :  { %1982 = vmatprep.subr.bf16.mxu0 %v571_v34 }
 0x172   :  { %1983 = vmatpush3.bf16.msra.mxu0 %v571_v34 }
 0x173   :  { %1984 = vmatprep.subr.bf16.mxu0 %v572_v22 }
 0x176   :  { %1985 = vmatpush3.bf16.msra.mxu0 %v572_v22 }
 0x177   :  { %1986 = vmatprep.subr.bf16.mxu0 %v573_v38 }
 0x17a   :  { %1987 = vmatpush3.bf16.msra.mxu0 %v573_v38 }
 0x17b   :  { %1988 = vmatprep.subr.bf16.mxu0 %v574_v44 }
 0x17e   :  { %1989 = vmatpush3.bf16.msra.mxu0 %v574_v44 }
 0x17f   :  { %1990 = vmatprep.subr.bf16.mxu0 %v575_v48 }
 0x182   :  { %1991 = vmatpush3.bf16.msra.mxu0 %v575_v48 }
 0x183   :  { %1992 = vmatprep.subr.bf16.mxu0 %v576_v52 }
 0x186   :  { %1993 = vmatpush3.bf16.msra.mxu0 %v576_v52 }
 0x189   :  { %1995 = vmatmul.mubr.bf16.vlgmr.msra.gmra.mrb[32].mxu0 %v2621_v56 }
 0x18a   :  { %1998 = vmatprep.mubr.bf16.mxu0 %v2623_v60 }
 0x191   :  { %1999 = vmatmul.mubr.bf16.gmra.mrb[36].mxu0 %v2627_v1 }
 0x192   :  { %2002 = vmatprep.mubr.bf16.mxu0 %v2629_v5 }
 0x199   :  { %2003 = vmatmul.mubr.bf16.gmra.mrb[40].mxu0 %v2633_v0 }
 0x19a   :  { %2006 = vmatprep.mubr.bf16.mxu0 %v2635_v9 }
 0x1a1   :  { %2007 = vmatmul.mubr.bf16.gmra.mrb[44].mxu0 %v2639_v13 }
 0x1a2   :  { %2058 = vmatprep.mubr.bf16.mxu0 %v2617_v14 }
 0x25c   :  { %v1996_v17 = vpop.f32.mrb[32].mxu0 }
 0x25d   :  { %v611_v21 = vpop.f32.mrb[33].mxu0  ;;  %v676_v25 = vadd.f32 %v1996_v17, %v2535_v50 }
 0x25e   :  { %v1997_v22 = vpop.f32.mrb[34].mxu0  ;;  %v674_v30 = vadd.f32 %v611_v21, %v2523_v42 }
 0x25f   :  { %v677_v26 = vadd.f32 %v1997_v22, %v2541_v54  ;;  %v614_v29 = vpop.f32.mrb[35].mxu0 }
 0x260   :  { %v675_v33 = vadd.f32 %v614_v29, %v2529_v46 }
 0x261   :  { %v691_v34 = vpack.c.bf16 %v677_v26, %v676_v25 }
 0x262   :  { %v690_v37 = vpack.c.bf16 %v675_v33, %v674_v30 }
 0x264   :  { %v2000_v38 = vpop.f32.mrb[36].mxu0  ;;  %2010 = vmatprep.subr.bf16.mxu1 %v690_v37 }
 0x265   :  { %v627_v44 = vpop.f32.mrb[37].mxu0  ;;  %2011 = vmatpush3.bf16.msra.mxu1 %v690_v37  ;;  %v680_v52 = vadd.f32 %v2000_v38, %v2559_v3 }
 0x266   :  { %v2001_v48 = vpop.f32.mrb[38].mxu0  ;;  %2012 = vmatprep.subr.bf16.mxu1 %v691_v34  ;;  %v678_v54 = vadd.f32 %v627_v44, %v2547_v58 }
 0x267   :  { %v681_v14 = vadd.f32 %v2001_v48, %v2565_v7  ;;  %v630_v50 = vpop.f32.mrb[39].mxu0  ;;  %v2244_v48 = vld [vmem:[#allocation9 + $0x20] ss:$16 sps:$4 sm:$0xff]  }
 0x268   :  { %v679_v17 = vadd.f32 %v630_v50, %v2553_v62  ;;  %v2250_v50 = vld [vmem:[#allocation9 + $0x40] ss:$16 sps:$4 sm:$0xff]  }
 0x269   :  { %v693_v42 = vpack.c.bf16 %v681_v14, %v680_v52  ;;  %2013 = vmatpush3.bf16.msra.mxu1 %v691_v34  ;;  %v2252_v52 = vld [vmem:[#allocation9 + $0x44] ss:$16 sps:$4 sm:$0xff]  }
 0x26a   :  { %v692_v46 = vpack.c.bf16 %v679_v17, %v678_v54  ;;  %v2258_v54 = vld [vmem:[#allocation9 + $0x64] ss:$16 sps:$4 sm:$0xff]   ;;  %v2256_v17 = vld [vmem:[#allocation9 + $0x60] ss:$16 sps:$4 sm:$0xff]  }
 0x26c   :  { %v2004_v21 = vpop.f32.mrb[40].mxu0  ;;  %2014 = vmatprep.subr.bf16.mxu1 %v692_v46 }
 0x26d   :  { %v643_v22 = vpop.f32.mrb[41].mxu0  ;;  %2015 = vmatpush3.bf16.msra.mxu1 %v692_v46  ;;  %v684_v26 = vadd.f32 %v2004_v21, %v2583_v19  ;;  %v2262_v46 = vld [vmem:[#allocation9 + $0x80] ss:$16 sps:$4 sm:$0xff]   ;;  %v2270_v21 = vld [vmem:[#allocation9 + $0xa4] ss:$16 sps:$4 sm:$0xff]  }
 0x26e   :  { %v2005_v25 = vpop.f32.mrb[42].mxu0  ;;  %2016 = vmatprep.subr.bf16.mxu1 %v693_v42  ;;  %v682_v7 = vadd.f32 %v643_v22, %v2571_v11  ;;  %v2268_v22 = vld [vmem:[#allocation9 + $0xa0] ss:$16 sps:$4 sm:$0xff]  }
 0x26f   :  { %v685_v3 = vadd.f32 %v2005_v25, %v2589_v23  ;;  %v646_v29 = vpop.f32.mrb[43].mxu0 }
 0x270   :  { %v683_v58 = vadd.f32 %v646_v29, %v2577_v15 }
 0x271   :  { %v695_v30 = vpack.c.bf16 %v685_v3, %v684_v26  ;;  %2017 = vmatpush3.bf16.msra.mxu1 %v693_v42  ;;  %v2264_v42 = vld [vmem:[#allocation9 + $0x84] ss:$16 sps:$4 sm:$0xff]  }
 0x272   :  { %v694_v62 = vpack.c.bf16 %v683_v58, %v682_v7 }
 0x274   :  { %v2008_v14 = vpop.f32.mrb[44].mxu0  ;;  %2018 = vmatprep.subr.bf16.mxu1 %v694_v62 }
 0x275   :  { %v659_v33 = vpop.f32.mrb[45].mxu0  ;;  %2019 = vmatpush3.bf16.msra.mxu1 %v694_v62  ;;  %v688_v37 = vadd.f32 %v2008_v14, %v2607_v35  ;;  %v2240_v35 = vld [vmem:[#allocation9 + $0x4] ss:$16 sps:$4 sm:$0xff]  }
 0x276   :  { %v2009_v34 = vpop.f32.mrb[46].mxu0  ;;  %2020 = vmatprep.subr.bf16.mxu1 %v695_v30  ;;  %v686_v23 = vadd.f32 %v659_v33, %v2595_v27  ;;  %v2955_v27 = vmov 0  }
 0x277   :  { %v689_v19 = vadd.f32 %v2009_v34, %v2613_v39  ;;  %v662_v38 = vpop.f32.mrb[47].mxu0  ;;  %v2246_v39 = vld [vmem:[#allocation9 + $0x24] ss:$16 sps:$4 sm:$0xff]  }
 0x278   :  { %v687_v11 = vadd.f32 %v662_v38, %v2601_v31  ;;  %v2238_v31 = vld [vmem:[#allocation9] ss:$16 sps:$4 sm:$0xff]  }
 0x279   :  { %v697_v44 = vpack.c.bf16 %v689_v19, %v688_v37  ;;  %2021 = vmatpush3.bf16.msra.mxu1 %v695_v30 }
 0x27a   :  { %v696_v15 = vpack.c.bf16 %v687_v11, %v686_v23 }
 0x27c   :  { %2022 = vmatprep.subr.bf16.mxu1 %v696_v15 }
 0x27d   :  { %2023 = vmatpush3.bf16.msra.mxu1 %v696_v15 }
 0x27e   :  { %2024 = vmatprep.subr.bf16.mxu1 %v697_v44 }
 0x281   :  { %2025 = vmatpush3.bf16.msra.mxu1 %v697_v44 }
 0x282   :  { %1155 = vmatprep.subr.bf16.mxu1 %v2240_v35 }
 0x284   :  { %2027 = vmatmul.mubr.bf16.vlgmr.msra.gmra.mrb[32].mxu1 %v2621_v56 }
 0x285   :  { %2030 = vmatprep.mubr.bf16.mxu1 %v2623_v60  ;;  %1156 = vmatpush1.bf16.msra.mxu1 %v2238_v31 }
 0x286   :  { %1157 = vmatprep.subr.bf16.mxu1 %v2246_v39 }
 0x289   :  { %1158 = vmatpush1.bf16.msra.mxu1 %v2244_v48 }
 0x28a   :  { %1159 = vmatprep.subr.bf16.mxu1 %v2252_v52 }
 0x28c   :  { %2031 = vmatmul.mubr.bf16.gmra.mrb[36].mxu1 %v2627_v1 }
 0x28d   :  { %2034 = vmatprep.mubr.bf16.mxu1 %v2629_v5  ;;  %1160 = vmatpush1.bf16.msra.mxu1 %v2250_v50 }
 0x28e   :  { %1161 = vmatprep.subr.bf16.mxu1 %v2258_v54 }
 0x291   :  { %1162 = vmatpush1.bf16.msra.mxu1 %v2256_v17 }
 0x292   :  { %1163 = vmatprep.subr.bf16.mxu1 %v2264_v42 }
 0x294   :  { %2035 = vmatmul.mubr.bf16.gmra.mrb[40].mxu1 %v2633_v0 }
 0x295   :  { %2038 = vmatprep.mubr.bf16.mxu1 %v2635_v9  ;;  %1164 = vmatpush1.bf16.msra.mxu1 %v2262_v46 }
 0x296   :  { %1165 = vmatprep.subr.bf16.mxu1 %v2270_v21  ;;  %v2243_v21 = vld [vmem:[#allocation9 + $0xc] ss:$16 sps:$4 sm:$0xff]  }
 0x299   :  { %1166 = vmatpush1.bf16.msra.mxu1 %v2268_v22  ;;  %v2241_v22 = vld [vmem:[#allocation9 + $0x8] ss:$16 sps:$4 sm:$0xff]  }
 0x29c   :  { %2039 = vmatmul.mubr.bf16.gmra.mrb[44].mxu1 %v2639_v13 }
 0x29d   :  { %1187 = vmatprep.mubr.bf16.mxu1 %v2955_v27 }
 0x357   :  { %v2028_v25 = vpop.f32.mrb[32].mxu1 }
 0x358   :  { %v732_v26 = vpop.f32.mrb[33].mxu1  ;;  %v797_v29 = vadd.f32 %v2028_v25, %v2537_v51  ;;  %v2249_v25 = vld [vmem:[#allocation9 + $0x2c] ss:$16 sps:$4 sm:$0xff]  }
 0x359   :  { %v2029_v3 = vpop.f32.mrb[34].mxu1  ;;  %v795_v30 = vadd.f32 %v732_v26, %v2525_v43  ;;  %v2259_v26 = vld [vmem:[#allocation9 + $0x68] ss:$16 sps:$4 sm:$0xff]  }
 0x35a   :  { %v798_v7 = vadd.f32 %v2029_v3, %v2543_v55  ;;  %v735_v58 = vpop.f32.mrb[35].mxu1  ;;  %v2267_v3 = vld [vmem:[#allocation9 + $0x8c] ss:$16 sps:$4 sm:$0xff]  }
 0x35b   :  { %v796_v62 = vadd.f32 %v735_v58, %v2531_v47  ;;  %v2271_v58 = vld [vmem:[#allocation9 + $0xa8] ss:$16 sps:$4 sm:$0xff]  }
 0x35c   :  { %v812_v14 = vpack.c.bf16 %v798_v7, %v797_v29  ;;  %v2265_v29 = vld [vmem:[#allocation9 + $0x88] ss:$16 sps:$4 sm:$0xff]   ;;  %v2273_v7 = vld [vmem:[#allocation9 + $0xac] ss:$16 sps:$4 sm:$0xff]  }
 0x35d   :  { %v811_v33 = vpack.c.bf16 %v796_v62, %v795_v30  ;;  %v2276_v30 = vld [vmem:[#allocation9 + $0xc4] ss:$16 sps:$4 sm:$0xff]   ;;  %v2279_v62 = vld [vmem:[#allocation9 + $0xcc] ss:$16 sps:$4 sm:$0xff]  }
 0x35e   :  { %1167 = vmatprep.subr.bf16.mxu1 %v2276_v30 }
 0x35f   :  { %v2032_v34 = vpop.f32.mrb[36].mxu1  ;;  %2042 = vmatprep.subr.bf16.mxu0 %v811_v33 }
 0x360   :  { %v748_v37 = vpop.f32.mrb[37].mxu1  ;;  %2043 = vmatpush3.bf16.msra.mxu0 %v811_v33  ;;  %v801_v38 = vadd.f32 %v2032_v34, %v2561_v4  ;;  %v2277_v33 = vld [vmem:[#allocation9 + $0xc8] ss:$16 sps:$4 sm:$0xff]   ;;  %v2282_v34 = vld [vmem:[#allocation9 + $0xe4] ss:$16 sps:$4 sm:$0xff]  }
 0x361   :  { %v2033_v19 = vpop.f32.mrb[38].mxu1  ;;  %2044 = vmatprep.subr.bf16.mxu0 %v812_v14  ;;  %v799_v55 = vadd.f32 %v748_v37, %v2549_v59  ;;  %v2285_v37 = vld [vmem:[#allocation9 + $0xec] ss:$16 sps:$4 sm:$0xff]  }
 0x362   :  { %v802_v23 = vadd.f32 %v2033_v19, %v2567_v8  ;;  %v751_v51 = vpop.f32.mrb[39].mxu1  ;;  %v2280_v19 = vld [vmem:[#allocation9 + $0xe0] ss:$16 sps:$4 sm:$0xff]  }
 0x363   :  { %v800_v11 = vadd.f32 %v751_v51, %v2555_v63 }
 0x364   :  { %v814_v43 = vpack.c.bf16 %v802_v23, %v801_v38  ;;  %2045 = vmatpush3.bf16.msra.mxu0 %v812_v14  ;;  %v2274_v14 = vld [vmem:[#allocation9 + $0xc0] ss:$16 sps:$4 sm:$0xff]   ;;  %v2283_v38 = vld [vmem:[#allocation9 + $0xe8] ss:$16 sps:$4 sm:$0xff]  }
 0x365   :  { %v813_v47 = vpack.c.bf16 %v800_v11, %v799_v55  ;;  %1168 = vmatpush1.bf16.msra.mxu1 %v2274_v14  ;;  %v2695_v11 = vld [vmem:[%s2940_s3] ss:$0 sm:$0xff] }
 0x366   :  { %1169 = vmatprep.subr.bf16.mxu1 %v2282_v34 }
 0x367   :  { %v2036_v44 = vpop.f32.mrb[40].mxu1  ;;  %2046 = vmatprep.subr.bf16.mxu0 %v813_v47 }
 0x368   :  { %v764_v15 = vpop.f32.mrb[41].mxu1  ;;  %2047 = vmatpush3.bf16.msra.mxu0 %v813_v47  ;;  %v805_v35 = vadd.f32 %v2036_v44, %v2585_v20 }
 0x369   :  { %v2037_v31 = vpop.f32.mrb[42].mxu1  ;;  %2048 = vmatprep.subr.bf16.mxu0 %v814_v43  ;;  %v803_v8 = vadd.f32 %v764_v15, %v2573_v12  ;;  %1170 = vmatpush1.bf16.msra.mxu1 %v2280_v19 }
 0x36a   :  { %v806_v4 = vadd.f32 %v2037_v31, %v2591_v24  ;;  %v767_v39 = vpop.f32.mrb[43].mxu1 }
 0x36b   :  { %v804_v59 = vadd.f32 %v767_v39, %v2579_v16 }
 0x36c   :  { %v816_v48 = vpack.c.bf16 %v806_v4, %v805_v35  ;;  %2049 = vmatpush3.bf16.msra.mxu0 %v814_v43 }
 0x36d   :  { %v815_v63 = vpack.c.bf16 %v804_v59, %v803_v8 }
 0x36f   :  { %v2040_v52 = vpop.f32.mrb[44].mxu1  ;;  %2050 = vmatprep.subr.bf16.mxu0 %v815_v63 }
 0x370   :  { %v780_v50 = vpop.f32.mrb[45].mxu1  ;;  %2051 = vmatpush3.bf16.msra.mxu0 %v815_v63  ;;  %v809_v17 = vadd.f32 %v2040_v52, %v2609_v36  ;;  %v2247_v36 = vld [vmem:[#allocation9 + $0x28] ss:$16 sps:$4 sm:$0xff]  }
 0x371   :  { %v2041_v54 = vpop.f32.mrb[46].mxu1  ;;  %2052 = vmatprep.subr.bf16.mxu0 %v816_v48  ;;  %v807_v24 = vadd.f32 %v780_v50, %v2597_v28  ;;  %v2255_v28 = vld [vmem:[#allocation9 + $0x4c] ss:$16 sps:$4 sm:$0xff]  }
 0x372   :  { %v810_v20 = vadd.f32 %v2041_v54, %v2615_v40  ;;  %v783_v42 = vpop.f32.mrb[47].mxu1  ;;  %v2261_v40 = vld [vmem:[#allocation9 + $0x6c] ss:$16 sps:$4 sm:$0xff]  }
 0x373   :  { %v808_v12 = vadd.f32 %v783_v42, %v2603_v32  ;;  %v2253_v32 = vld [vmem:[#allocation9 + $0x48] ss:$16 sps:$4 sm:$0xff]  }
 0x374   :  { %v818_v46 = vpack.c.bf16 %v810_v20, %v809_v17  ;;  %2053 = vmatpush3.bf16.msra.mxu0 %v816_v48 }
 0x375   :  { %v817_v16 = vpack.c.bf16 %v808_v12, %v807_v24 }
 0x377   :  { %2054 = vmatprep.subr.bf16.mxu0 %v817_v16 }
 0x378   :  { %2055 = vmatpush3.bf16.msra.mxu0 %v817_v16 }
 0x379   :  { %2056 = vmatprep.subr.bf16.mxu0 %v818_v46 }
 0x37c   :  { %2057 = vmatpush3.bf16.msra.mxu0 %v818_v46 }
 0x37d   :  { %1268 = vmatprep.subr.bf16.mxu0 %v2243_v21 }
 0x37f   :  { %2059 = vmatmul.mubr.bf16.vlgmr.msra.gmra.mrb[48].mxu0 %v2621_v56 }
 0x380   :  { %2062 = vmatprep.mubr.bf16.mxu0 %v2623_v60  ;;  %1269 = vmatpush1.bf16.msra.mxu0 %v2241_v22  ;;  %v2956_v22 = vld [vmem:[#allocation20_spill] sm:$0xff] }
 0x381   :  { %1270 = vmatprep.subr.bf16.mxu0 %v2249_v25 }
 0x384   :  { %1271 = vmatpush1.bf16.msra.mxu0 %v2247_v36 }
 0x385   :  { %1272 = vmatprep.subr.bf16.mxu0 %v2255_v28 }
 0x387   :  { %2063 = vmatmul.mubr.bf16.gmra.mrb[52].mxu0 %v2627_v1 }
 0x388   :  { %2066 = vmatprep.mubr.bf16.mxu0 %v2629_v5  ;;  %1273 = vmatpush1.bf16.msra.mxu0 %v2253_v32  ;;  %v2957_v32 = vld [vmem:[#allocation19_spill] sm:$0xff] }
 0x389   :  { %1274 = vmatprep.subr.bf16.mxu0 %v2261_v40 }
 0x38c   :  { %1275 = vmatpush1.bf16.msra.mxu0 %v2259_v26 }
 0x38d   :  { %1276 = vmatprep.subr.bf16.mxu0 %v2267_v3 }
 0x38f   :  { %2067 = vmatmul.mubr.bf16.gmra.mrb[56].mxu0 %v2633_v0 }
 0x390   :  { %2070 = vmatprep.mubr.bf16.mxu0 %v2635_v9  ;;  %1277 = vmatpush1.bf16.msra.mxu0 %v2265_v29 }
 0x391   :  { %1278 = vmatprep.subr.bf16.mxu0 %v2273_v7  ;;  %v2958_v7 = vld [vmem:[#allocation23_spill] sm:$0xff] }
 0x394   :  { %1279 = vmatpush1.bf16.msra.mxu0 %v2271_v58 }
 0x395   :  { %1280 = vmatprep.subr.bf16.mxu0 %v2279_v62  ;;  %v2959_v62 = vld [vmem:[#allocation21_spill] sm:$0xff] }
 0x397   :  { %2071 = vmatmul.mubr.bf16.gmra.mrb[60].mxu0 %v2639_v13 }
 0x398   :  { %1300 = vmatprep.mubr.bf16.mxu0 %v2955_v27  ;;  %1281 = vmatpush1.bf16.msra.mxu0 %v2277_v33 }
 0x399   :  { %1282 = vmatprep.subr.bf16.mxu0 %v2285_v37  ;;  %v2960_v37 = vld [vmem:[#allocation24_spill] sm:$0xff] }
 0x39c   :  { %1283 = vmatpush1.bf16.msra.mxu0 %v2283_v38 }
 0x452   :  { %v2060_v23 = vpop.f32.mrb[48].mxu0 }
 0x453   :  { %v918_v51 = vadd.f32 %v2060_v23, %v2533_v49  ;;  %v853_v55 = vpop.f32.mrb[49].mxu0 }
 0x454   :  { %v916_v43 = vadd.f32 %v853_v55, %v2521_v41  ;;  %v2061_v47 = vpop.f32.mrb[50].mxu0 }
 0x455   :  { %v919_v44 = vadd.f32 %v2061_v47, %v2539_v53  ;;  %v856_v15 = vpop.f32.mrb[51].mxu0  ;;  %v941_v35 = vadd.f32 %v2695_v11, %v918_v51  ;;  %v2961_v51 = vld [vmem:[#allocation22_spill] sm:$0xff] }
 0x456   :  { %v917_v31 = vadd.f32 %v856_v15, %v2527_v45  ;;  %v939_v49 = vadd.f32 %v2695_v11, %v916_v43 }
 0x457   :  { %v942_v4 = vadd.f32 %v2695_v11, %v919_v44 }
 0x458   :  { %v940_v39 = vadd.f32 %v2695_v11, %v917_v31 }
 0x459   :  { %v956_v8 = vpack.c.bf16 %v942_v4, %v941_v35 }
 0x45a   :  { %v955_v59 = vpack.c.bf16 %v940_v39, %v939_v49  ;;  %v2064_v48 = vpop.f32.mrb[52].mxu0 }
 0x45b   :  { %v922_v63 = vadd.f32 %v2064_v48, %v2557_v2  ;;  %v869_v41 = vpop.f32.mrb[53].mxu0 }
 0x45c   :  { %1188 = vmatmul.mubr.bf16.vlgmr.msra.gmra.mrb[48].mxu1 %v955_v59  ;;  %1301 = vmatmul.mubr.bf16.vlgmr.msra.gmra.mrb[64].mxu0 %v955_v59  ;;  %v920_v53 = vadd.f32 %v869_v41, %v2545_v57  ;;  %v2065_v52 = vpop.f32.mrb[54].mxu0 }
 0x45d   :  { %v945_v45 = vadd.f32 %v2695_v11, %v922_v63  ;;  %v923_v50 = vadd.f32 %v2065_v52, %v2563_v6  ;;  %v872_v54 = vpop.f32.mrb[55].mxu0  ;;  %1197 = vmatprep.mubr.bf16.mxu1 %v2955_v27  ;;  %1310 = vmatprep.mubr.bf16.mxu0 %v2955_v27 }
 0x45e   :  { %v943_v17 = vadd.f32 %v2695_v11, %v920_v53  ;;  %v921_v20 = vadd.f32 %v872_v54, %v2551_v61 }
 0x45f   :  { %v946_v2 = vadd.f32 %v2695_v11, %v923_v50 }
 0x460   :  { %v944_v42 = vadd.f32 %v2695_v11, %v921_v20 }
 0x461   :  { %v958_v24 = vpack.c.bf16 %v946_v2, %v945_v45 }
 0x462   :  { %v957_v57 = vpack.c.bf16 %v944_v42, %v943_v17  ;;  %v2068_v12 = vpop.f32.mrb[56].mxu0 }
 0x463   :  { %v926_v46 = vadd.f32 %v2068_v12, %v2581_v18  ;;  %v885_v16 = vpop.f32.mrb[57].mxu0 }
 0x464   :  { %1198 = vmatmul.mubr.bf16.gmra.mrb[52].mxu1 %v956_v8  ;;  %1311 = vmatmul.mubr.bf16.gmra.mrb[68].mxu0 %v956_v8  ;;  %v924_v6 = vadd.f32 %v885_v16, %v2569_v10  ;;  %v2069_v21 = vpop.f32.mrb[58].mxu0 }
 0x465   :  { %1207 = vmatprep.mubr.bf16.mxu1 %v2955_v27  ;;  %1320 = vmatprep.mubr.bf16.mxu0 %v2955_v27  ;;  %v949_v61 = vadd.f32 %v2695_v11, %v926_v46  ;;  %v927_v25 = vadd.f32 %v2069_v21, %v2956_v22  ;;  %v888_v36 = vpop.f32.mrb[59].mxu0 }
 0x466   :  { %v947_v28 = vadd.f32 %v2695_v11, %v924_v6  ;;  %v925_v40 = vadd.f32 %v888_v36, %v2957_v32 }
 0x467   :  { %v950_v18 = vadd.f32 %v2695_v11, %v927_v25 }
 0x468   :  { %v948_v26 = vadd.f32 %v2695_v11, %v925_v40 }
 0x469   :  { %v960_v3 = vpack.c.bf16 %v950_v18, %v949_v61 }
 0x46a   :  { %v959_v10 = vpack.c.bf16 %v948_v26, %v947_v28  ;;  %v2072_v29 = vpop.f32.mrb[60].mxu0 }
 0x46b   :  { %v930_v58 = vadd.f32 %v2072_v29, %v2958_v7  ;;  %v901_v30 = vpop.f32.mrb[61].mxu0 }
 0x46c   :  { %1208 = vmatmul.mubr.bf16.gmra.mrb[56].mxu1 %v957_v57  ;;  %1321 = vmatmul.mubr.bf16.gmra.mrb[72].mxu0 %v957_v57  ;;  %v928_v14 = vadd.f32 %v901_v30, %v2959_v62  ;;  %v2073_v33 = vpop.f32.mrb[62].mxu0 }
 0x46d   :  { %1217 = vmatprep.mubr.bf16.mxu1 %v2955_v27  ;;  %1330 = vmatprep.mubr.bf16.mxu0 %v2955_v27  ;;  %v953_v34 = vadd.f32 %v2695_v11, %v930_v58  ;;  %v931_v19 = vadd.f32 %v2073_v33, %v2960_v37  ;;  %v904_v38 = vpop.f32.mrb[63].mxu0 }
 0x46e   :  { %v951_v23 = vadd.f32 %v2695_v11, %v928_v14  ;;  %v929_v55 = vadd.f32 %v904_v38, %v2961_v51 }
 0x46f   :  { %v954_v43 = vadd.f32 %v2695_v11, %v931_v19 }
 0x470   :  { %v952_v47 = vadd.f32 %v2695_v11, %v929_v55  ;;  %v2962_v11 = vld [vmem:[#allocation25_spill] sm:$0xff] }
 0x471   :  { %v962_v44 = vpack.c.bf16 %v954_v43, %v953_v34 }
 0x472   :  { %v961_v15 = vpack.c.bf16 %v952_v47, %v951_v23 }
 0x474   :  { %1218 = vmatmul.mubr.bf16.gmra.mrb[60].mxu1 %v958_v24  ;;  %1331 = vmatmul.mubr.bf16.gmra.mrb[76].mxu0 %v958_v24 }
 0x475   :  { %1227 = vmatprep.mubr.bf16.mxu1 %v2955_v27  ;;  %1340 = vmatprep.mubr.bf16.mxu0 %v2955_v27 }
 0x47c   :  { %1228 = vmatmul.mubr.bf16.gmra.mrb[64].mxu1 %v959_v10  ;;  %1341 = vmatmul.mubr.bf16.gmra.mrb[80].mxu0 %v959_v10 }
 0x47d   :  { %1237 = vmatprep.mubr.bf16.mxu1 %v2955_v27  ;;  %1350 = vmatprep.mubr.bf16.mxu0 %v2955_v27 }
 0x484   :  { %1238 = vmatmul.mubr.bf16.gmra.mrb[68].mxu1 %v960_v3  ;;  %1351 = vmatmul.mubr.bf16.gmra.mrb[84].mxu0 %v960_v3 }
 0x485   :  { %1247 = vmatprep.mubr.bf16.mxu1 %v2955_v27  ;;  %1360 = vmatprep.mubr.bf16.mxu0 %v2955_v27 }
 0x48c   :  { %1248 = vmatmul.mubr.bf16.gmra.mrb[72].mxu1 %v961_v15  ;;  %1361 = vmatmul.mubr.bf16.gmra.mrb[88].mxu0 %v961_v15 }
 0x48d   :  { %1257 = vmatprep.mubr.bf16.mxu1 %v2955_v27  ;;  %1370 = vmatprep.mubr.bf16.mxu0 %v2955_v27 }
 0x494   :  { %1258 = vmatmul.mubr.bf16.gmra.mrb[76].mxu1 %v962_v44  ;;  %1371 = vmatmul.mubr.bf16.gmra.mrb[92].mxu0 %v962_v44 }
 0x495   :  { %2090 = vmatprep.mubr.bf16.mxu1 %v2962_v11  ;;  %2122 = vmatprep.mubr.bf16.mxu0 %v2962_v11 }
 0x52f   :  { %v2744_v31 = vpop.f32.mrb[48].mxu1  ;;  %v2746_v35 = vpop.f32.mrb[64].mxu0 }
 0x530   :  { %v2748_v4 = vpop.f32.mrb[49].mxu1  ;;  %v1304_v49 = vpop.f32.mrb[65].mxu0 }
 0x531   :  { %v2750_v39 = vpop.f32.mrb[50].mxu1  ;;  %v2752_v8 = vpop.f32.mrb[66].mxu0 }
 0x532   :  { %v2754_v59 = vpop.f32.mrb[51].mxu1  ;;  %v1308_v27 = vpop.f32.mrb[67].mxu0 }
 0x533   :  { %v1381_v48 = vpack.c.bf16 %v1308_v27, %v1304_v49 }
 0x535   :  { %2074 = vmatprep.subr.bf16.mxu1 %v1381_v48 }
 0x536   :  { %2075 = vmatpush3.bf16.msra.mxu1 %v1381_v48 }
 0x537   :  { %v2756_v63 = vpop.f32.mrb[52].mxu1  ;;  %v2758_v41 = vpop.f32.mrb[68].mxu0 }
 0x538   :  { %v2760_v53 = vpop.f32.mrb[53].mxu1  ;;  %v1314_v52 = vpop.f32.mrb[69].mxu0 }
 0x539   :  { %v2762_v45 = vpop.f32.mrb[54].mxu1  ;;  %v2764_v50 = vpop.f32.mrb[70].mxu0 }
 0x53a   :  { %v2766_v54 = vpop.f32.mrb[55].mxu1  ;;  %v1318_v17 = vpop.f32.mrb[71].mxu0 }
 0x53b   :  { %v1382_v20 = vpack.c.bf16 %v1318_v17, %v1314_v52 }
 0x53d   :  { %2076 = vmatprep.subr.bf16.mxu1 %v1382_v20 }
 0x53e   :  { %2077 = vmatpush3.bf16.msra.mxu1 %v1382_v20 }
 0x53f   :  { %v2768_v2 = vpop.f32.mrb[56].mxu1  ;;  %v2770_v42 = vpop.f32.mrb[72].mxu0 }
 0x540   :  { %v2772_v24 = vpop.f32.mrb[57].mxu1  ;;  %v1324_v57 = vpop.f32.mrb[73].mxu0 }
 0x541   :  { %v2774_v12 = vpop.f32.mrb[58].mxu1  ;;  %v2776_v46 = vpop.f32.mrb[74].mxu0 }
 0x542   :  { %v2778_v16 = vpop.f32.mrb[59].mxu1  ;;  %v1328_v6 = vpop.f32.mrb[75].mxu0 }
 0x543   :  { %v1383_v21 = vpack.c.bf16 %v1328_v6, %v1324_v57 }
 0x545   :  { %2078 = vmatprep.subr.bf16.mxu1 %v1383_v21 }
 0x546   :  { %2079 = vmatpush3.bf16.msra.mxu1 %v1383_v21 }
 0x547   :  { %v2780_v61 = vpop.f32.mrb[60].mxu1  ;;  %v2782_v22 = vpop.f32.mrb[76].mxu0 }
 0x548   :  { %v2784_v25 = vpop.f32.mrb[61].mxu1  ;;  %v1334_v36 = vpop.f32.mrb[77].mxu0 }
 0x549   :  { %v2786_v28 = vpop.f32.mrb[62].mxu1  ;;  %v2788_v32 = vpop.f32.mrb[78].mxu0 }
 0x54a   :  { %v2790_v40 = vpop.f32.mrb[63].mxu1  ;;  %v1338_v18 = vpop.f32.mrb[79].mxu0 }
 0x54b   :  { %v1384_v26 = vpack.c.bf16 %v1338_v18, %v1334_v36 }
 0x54d   :  { %2080 = vmatprep.subr.bf16.mxu1 %v1384_v26 }
 0x54e   :  { %2081 = vmatpush3.bf16.msra.mxu1 %v1384_v26 }
 0x54f   :  { %v2792_v3 = vpop.f32.mrb[64].mxu1  ;;  %v2794_v10 = vpop.f32.mrb[80].mxu0 }
 0x550   :  { %v2796_v29 = vpop.f32.mrb[65].mxu1  ;;  %v1344_v7 = vpop.f32.mrb[81].mxu0 }
 0x551   :  { %v2798_v58 = vpop.f32.mrb[66].mxu1  ;;  %v2800_v30 = vpop.f32.mrb[82].mxu0 }
 0x552   :  { %2963 = vst [vmem:[#allocation20_spill] sm:$0xff] %v2798_v58  ;;  %v2802_v62 = vpop.f32.mrb[67].mxu1  ;;  %v1348_v14 = vpop.f32.mrb[83].mxu0 }
 0x553   :  { %v1385_v33 = vpack.c.bf16 %v1348_v14, %v1344_v7 }
 0x555   :  { %2082 = vmatprep.subr.bf16.mxu1 %v1385_v33 }
 0x556   :  { %2083 = vmatpush3.bf16.msra.mxu1 %v1385_v33 }
 0x557   :  { %v2804_v34 = vpop.f32.mrb[68].mxu1  ;;  %v2806_v37 = vpop.f32.mrb[84].mxu0 }
 0x558   :  { %v2808_v19 = vpop.f32.mrb[69].mxu1  ;;  %v1354_v38 = vpop.f32.mrb[85].mxu0 }
 0x559   :  { %v2810_v23 = vpop.f32.mrb[70].mxu1  ;;  %v2812_v51 = vpop.f32.mrb[86].mxu0 }
 0x55a   :  { %v2814_v55 = vpop.f32.mrb[71].mxu1  ;;  %v1358_v43 = vpop.f32.mrb[87].mxu0 }
 0x55b   :  { %v1386_v47 = vpack.c.bf16 %v1358_v43, %v1354_v38 }
 0x55d   :  { %2084 = vmatprep.subr.bf16.mxu1 %v1386_v47 }
 0x55e   :  { %2085 = vmatpush3.bf16.msra.mxu1 %v1386_v47 }
 0x55f   :  { %v2816_v44 = vpop.f32.mrb[72].mxu1  ;;  %v2818_v15 = vpop.f32.mrb[88].mxu0 }
 0x560   :  { %2964 = vst [vmem:[#allocation19_spill] sm:$0xff] %v2816_v44  ;;  %v2820_v49 = vpop.f32.mrb[73].mxu1  ;;  %v1364_v27 = vpop.f32.mrb[89].mxu0 }
 0x561   :  { %v2822_v48 = vpop.f32.mrb[74].mxu1  ;;  %v2824_v52 = vpop.f32.mrb[90].mxu0 }
 0x562   :  { %2965 = vst [vmem:[#allocation23_spill] sm:$0xff] %v2822_v48  ;;  %v2826_v17 = vpop.f32.mrb[75].mxu1  ;;  %v1368_v20 = vpop.f32.mrb[91].mxu0 }
 0x563   :  { %v1387_v57 = vpack.c.bf16 %v1368_v20, %v1364_v27 }
 0x565   :  { %2086 = vmatprep.subr.bf16.mxu1 %v1387_v57 }
 0x566   :  { %2087 = vmatpush3.bf16.msra.mxu1 %v1387_v57 }
 0x567   :  { %v2828_v6 = vpop.f32.mrb[76].mxu1  ;;  %v1372_v21 = vpop.f32.mrb[92].mxu0 }
 0x568   :  { %2966 = vst [vmem:[#allocation21_spill] sm:$0xff] %v2828_v6  ;;  %v2830_v36 = vpop.f32.mrb[77].mxu1  ;;  %v1374_v18 = vpop.f32.mrb[93].mxu0 }
 0x569   :  { %v2832_v26 = vpop.f32.mrb[78].mxu1  ;;  %v1376_v7 = vpop.f32.mrb[94].mxu0 }
 0x56a   :  { %2967 = vst [vmem:[#allocation24_spill] sm:$0xff] %v2832_v26  ;;  %v2834_v14 = vpop.f32.mrb[79].mxu1  ;;  %v1378_v33 = vpop.f32.mrb[95].mxu0 }
 0x56b   :  { %v1388_v38 = vpack.c.bf16 %v1378_v33, %v1374_v18 }
 0x56d   :  { %2088 = vmatprep.subr.bf16.mxu1 %v1388_v38 }
 0x56e   :  { %2089 = vmatpush3.bf16.msra.mxu1 %v1388_v38 }
 0x571   :  { %2091 = vmatmul.mubr.bf16.vlgmr.msra.gmra.mrb[80].mxu1 %v2621_v56 }
 0x572   :  { %2094 = vmatprep.mubr.bf16.mxu1 %v2623_v60 }
 0x579   :  { %2095 = vmatmul.mubr.bf16.gmra.mrb[84].mxu1 %v2627_v1 }
 0x57a   :  { %2098 = vmatprep.mubr.bf16.mxu1 %v2629_v5 }
 0x581   :  { %2099 = vmatmul.mubr.bf16.gmra.mrb[88].mxu1 %v2633_v0 }
 0x582   :  { %2102 = vmatprep.mubr.bf16.mxu1 %v2635_v9 }
 0x589   :  { %2103 = vmatmul.mubr.bf16.gmra.mrb[92].mxu1 %v2639_v13 }
 0x58a   :  { %2154 = vmatprep.mubr.bf16.mxu1 %v2962_v11 }
 0x644   :  { %v2092_v43 = vpop.f32.mrb[80].mxu1 }
 0x645   :  { %v1488_v47 = vadd.f32 %v2092_v43, %v2758_v41  ;;  %v1423_v27 = vpop.f32.mrb[81].mxu1 }
 0x646   :  { %v1486_v20 = vadd.f32 %v1423_v27, %v2746_v35  ;;  %v2093_v57 = vpop.f32.mrb[82].mxu1 }
 0x647   :  { %v1489_v18 = vadd.f32 %v2093_v57, %v2764_v50  ;;  %v1426_v33 = vpop.f32.mrb[83].mxu1 }
 0x648   :  { %v1487_v38 = vadd.f32 %v1426_v33, %v2752_v8 }
 0x649   :  { %v1503_v48 = vpack.c.bf16 %v1489_v18, %v1488_v47 }
 0x64a   :  { %v1502_v26 = vpack.c.bf16 %v1487_v38, %v1486_v20 }
 0x64c   :  { %v2096_v44 = vpop.f32.mrb[84].mxu1  ;;  %2106 = vmatprep.subr.bf16.mxu0 %v1502_v26 }
 0x64d   :  { %v1492_v6 = vadd.f32 %v2096_v44, %v2782_v22  ;;  %v1439_v58 = vpop.f32.mrb[85].mxu1  ;;  %2107 = vmatpush3.bf16.msra.mxu0 %v1502_v26 }
 0x64e   :  { %v1490_v11 = vadd.f32 %v1439_v58, %v2770_v42  ;;  %v2097_v41 = vpop.f32.mrb[86].mxu1  ;;  %2108 = vmatprep.subr.bf16.mxu0 %v1503_v48 }
 0x64f   :  { %v1493_v35 = vadd.f32 %v2097_v41, %v2788_v32  ;;  %v1442_v43 = vpop.f32.mrb[87].mxu1 }
 0x650   :  { %v1491_v50 = vadd.f32 %v1442_v43, %v2776_v46 }
 0x651   :  { %v1505_v27 = vpack.c.bf16 %v1493_v35, %v1492_v6  ;;  %2109 = vmatpush3.bf16.msra.mxu0 %v1503_v48 }
 0x652   :  { %v1504_v8 = vpack.c.bf16 %v1491_v50, %v1490_v11 }
 0x654   :  { %v2100_v47 = vpop.f32.mrb[88].mxu1  ;;  %2110 = vmatprep.subr.bf16.mxu0 %v1504_v8 }
 0x655   :  { %v1496_v20 = vadd.f32 %v2100_v47, %v2806_v37  ;;  %v1455_v57 = vpop.f32.mrb[89].mxu1  ;;  %2111 = vmatpush3.bf16.msra.mxu0 %v1504_v8 }
 0x656   :  { %v1494_v22 = vadd.f32 %v1455_v57, %v2794_v10  ;;  %v2101_v44 = vpop.f32.mrb[90].mxu1  ;;  %2112 = vmatprep.subr.bf16.mxu0 %v1505_v27 }
 0x657   :  { %v1497_v42 = vadd.f32 %v2101_v44, %v2812_v51  ;;  %v1458_v58 = vpop.f32.mrb[91].mxu1 }
 0x658   :  { %v1495_v32 = vadd.f32 %v1458_v58, %v2800_v30 }
 0x659   :  { %v1507_v26 = vpack.c.bf16 %v1497_v42, %v1496_v20  ;;  %2113 = vmatpush3.bf16.msra.mxu0 %v1505_v27 }
 0x65a   :  { %v1506_v46 = vpack.c.bf16 %v1495_v32, %v1494_v22 }
 0x65c   :  { %v2104_v48 = vpop.f32.mrb[92].mxu1  ;;  %2114 = vmatprep.subr.bf16.mxu0 %v1506_v46 }
 0x65d   :  { %v1500_v6 = vadd.f32 %v2104_v48, %v1372_v21  ;;  %v1471_v18 = vpop.f32.mrb[93].mxu1  ;;  %2115 = vmatpush3.bf16.msra.mxu0 %v1506_v46 }
 0x65e   :  { %v1498_v37 = vadd.f32 %v1471_v18, %v2818_v15  ;;  %v2105_v33 = vpop.f32.mrb[94].mxu1  ;;  %2116 = vmatprep.subr.bf16.mxu0 %v1507_v26 }
 0x65f   :  { %v1501_v10 = vadd.f32 %v2105_v33, %v1376_v7  ;;  %v1474_v38 = vpop.f32.mrb[95].mxu1 }
 0x660   :  { %v1499_v11 = vadd.f32 %v1474_v38, %v2824_v52 }
 0x661   :  { %v1509_v51 = vpack.c.bf16 %v1501_v10, %v1500_v6  ;;  %2117 = vmatpush3.bf16.msra.mxu0 %v1507_v26 }
 0x662   :  { %v1508_v41 = vpack.c.bf16 %v1499_v11, %v1498_v37 }
 0x664   :  { %2118 = vmatprep.subr.bf16.mxu0 %v1508_v41 }
 0x665   :  { %2119 = vmatpush3.bf16.msra.mxu0 %v1508_v41 }
 0x666   :  { %2120 = vmatprep.subr.bf16.mxu0 %v1509_v51 }
 0x669   :  { %2121 = vmatpush3.bf16.msra.mxu0 %v1509_v51 }
 0x66c   :  { %2123 = vmatmul.mubr.bf16.vlgmr.msra.gmra.mrb[96].mxu0 %v2621_v56 }
 0x66d   :  { %2126 = vmatprep.mubr.bf16.mxu0 %v2623_v60 }
 0x674   :  { %2127 = vmatmul.mubr.bf16.gmra.mrb[100].mxu0 %v2627_v1 }
 0x675   :  { %2130 = vmatprep.mubr.bf16.mxu0 %v2629_v5 }
 0x67c   :  { %2131 = vmatmul.mubr.bf16.gmra.mrb[104].mxu0 %v2633_v0 }
 0x67d   :  { %2134 = vmatprep.mubr.bf16.mxu0 %v2635_v9 }
 0x684   :  { %2135 = vmatmul.mubr.bf16.gmra.mrb[108].mxu0 %v2639_v13 }
 0x73f   :  { %v2124_v30 = vpop.f32.mrb[96].mxu0 }
 0x740   :  { %v1609_v15 = vadd.f32 %v2124_v30, %v2760_v53  ;;  %v1544_v52 = vpop.f32.mrb[97].mxu0 }
 0x741   :  { %v1607_v21 = vadd.f32 %v1544_v52, %v2748_v4  ;;  %v2125_v7 = vpop.f32.mrb[98].mxu0 }
 0x742   :  { %v1610_v35 = vadd.f32 %v2125_v7, %v2766_v54  ;;  %v1547_v43 = vpop.f32.mrb[99].mxu0 }
 0x743   :  { %v1608_v50 = vadd.f32 %v1547_v43, %v2754_v59 }
 0x744   :  { %v1624_v27 = vpack.c.bf16 %v1610_v35, %v1609_v15 }
 0x745   :  { %v1623_v8 = vpack.c.bf16 %v1608_v50, %v1607_v21 }
 0x747   :  { %v2128_v47 = vpop.f32.mrb[100].mxu0  ;;  %2138 = vmatprep.subr.bf16.mxu1 %v1623_v8 }
 0x748   :  { %v1613_v20 = vadd.f32 %v2128_v47, %v2784_v25  ;;  %v1560_v57 = vpop.f32.mrb[101].mxu0  ;;  %2139 = vmatpush3.bf16.msra.mxu1 %v1623_v8 }
 0x749   :  { %v1611_v22 = vadd.f32 %v1560_v57, %v2772_v24  ;;  %v2129_v53 = vpop.f32.mrb[102].mxu0  ;;  %2140 = vmatprep.subr.bf16.mxu1 %v1624_v27 }
 0x74a   :  { %v1614_v4 = vadd.f32 %v2129_v53, %v2790_v40  ;;  %v1563_v44 = vpop.f32.mrb[103].mxu0 }
 0x74b   :  { %v1612_v54 = vadd.f32 %v1563_v44, %v2778_v16 }
 0x74c   :  { %v1626_v42 = vpack.c.bf16 %v1614_v4, %v1613_v20  ;;  %2141 = vmatpush3.bf16.msra.mxu1 %v1624_v27 }
 0x74d   :  { %v1625_v59 = vpack.c.bf16 %v1612_v54, %v1611_v22  ;;  %v2968_v22 = vld [vmem:[#allocation20_spill] sm:$0xff] }
 0x74f   :  { %v2132_v58 = vpop.f32.mrb[104].mxu0  ;;  %2142 = vmatprep.subr.bf16.mxu1 %v1625_v59 }
 0x750   :  { %v1617_v32 = vadd.f32 %v2132_v58, %v2808_v19  ;;  %v1576_v26 = vpop.f32.mrb[105].mxu0  ;;  %2143 = vmatpush3.bf16.msra.mxu1 %v1625_v59  ;;  %v2970_v59 = vld [vmem:[#allocation19_spill] sm:$0xff] }
 0x751   :  { %v1615_v25 = vadd.f32 %v1576_v26, %v2796_v29  ;;  %v2133_v46 = vpop.f32.mrb[106].mxu0  ;;  %2144 = vmatprep.subr.bf16.mxu1 %v1626_v42  ;;  %v2971_v26 = vld [vmem:[#allocation24_spill] sm:$0xff] }
 0x752   :  { %v1618_v24 = vadd.f32 %v2133_v46, %v2814_v55  ;;  %v1579_v48 = vpop.f32.mrb[107].mxu0 }
 0x753   :  { %v1616_v40 = vadd.f32 %v1579_v48, %v2802_v62  ;;  %v2972_v48 = vld [vmem:[#allocation23_spill] sm:$0xff] }
 0x754   :  { %v1628_v6 = vpack.c.bf16 %v1618_v24, %v1617_v32  ;;  %2145 = vmatpush3.bf16.msra.mxu1 %v1626_v42 }
 0x755   :  { %v1627_v16 = vpack.c.bf16 %v1616_v40, %v1615_v25 }
 0x757   :  { %v2136_v18 = vpop.f32.mrb[108].mxu0  ;;  %2146 = vmatprep.subr.bf16.mxu1 %v1627_v16 }
 0x758   :  { %v1621_v37 = vadd.f32 %v2136_v18, %v2830_v36  ;;  %v1592_v33 = vpop.f32.mrb[109].mxu0  ;;  %2147 = vmatpush3.bf16.msra.mxu1 %v1627_v16 }
 0x759   :  { %v1619_v19 = vadd.f32 %v1592_v33, %v2820_v49  ;;  %v2137_v10 = vpop.f32.mrb[110].mxu0  ;;  %2148 = vmatprep.subr.bf16.mxu1 %v1628_v6 }
 0x75a   :  { %v1622_v29 = vadd.f32 %v2137_v10, %v2834_v14  ;;  %v1595_v38 = vpop.f32.mrb[111].mxu0 }
 0x75b   :  { %v1620_v55 = vadd.f32 %v1595_v38, %v2826_v17  ;;  %v2891_v17 = vld [vmem:[%s2942_s5] ss:$0 sm:$0xff]  ;;  %s2413_s5 = smov [#allocation10]  }
 0x75c   :  { %v1630_v11 = vpack.c.bf16 %v1622_v29, %v1621_v37  ;;  %2149 = vmatpush3.bf16.msra.mxu1 %v1628_v6  ;;  %s1788_s23 = sshll.u32 %s2413_s5, 4  ;;  %s1789_s23 = int_to_ptr.vmem [resolvable:$true] %s1788_s23 }
 0x75d   :  { %v1629_v62 = vpack.c.bf16 %v1620_v55, %v1619_v19  ;;  %s2374_s24 = scalar_lea.vmem %s1789_s23, 2048  ;;  %p2379_p5 = scmp.lt.s32.totalorder %s1789_s23, %s1789_s23 }
 0x75e   :  { %p2375_p4 = scmp.ne.s32.totalorder %s1789_s23, %s2374_s24  ;;  %p2380_p6 = scmp.lt.s32.totalorder %s2374_s24, %s2374_s24 }
 0x75f   :  { %2150 = vmatprep.subr.bf16.mxu1 %v1629_v62 }
 0x760   :  { %2151 = vmatpush3.bf16.msra.mxu1 %v1629_v62  ;;  %p2381_p7 = por %p2380_p6, %p2379_p5 }
 0x761   :  { %2152 = vmatprep.subr.bf16.mxu1 %v1630_v11 }
 0x762   :  { %p2382_p8 = pnand %p2381_p7, %p2375_p4 }
 0x764   :  { %2153 = vmatpush3.bf16.msra.mxu1 %v1630_v11 }
 0x767   :  { %2155 = vmatmul.mubr.bf16.vlgmr.msra.gmra.mrb[96].mxu1 %v2621_v56 }
 0x768   :  { %2158 = vmatprep.mubr.bf16.mxu1 %v2623_v60 }
 0x76f   :  { %2159 = vmatmul.mubr.bf16.gmra.mrb[100].mxu1 %v2627_v1 }
 0x770   :  { %2162 = vmatprep.mubr.bf16.mxu1 %v2629_v5 }
 0x777   :  { %2163 = vmatmul.mubr.bf16.gmra.mrb[104].mxu1 %v2633_v0 }
 0x778   :  { %2166 = vmatprep.mubr.bf16.mxu1 %v2635_v9 }
 0x77f   :  { %2167 = vmatmul.mubr.bf16.gmra.mrb[108].mxu1 %v2639_v13 }
 0x83a   :  { %v2156_v49 = vpop.f32.mrb[96].mxu1 }
 0x83b   :  { %v1730_v56 = vadd.f32 %v2156_v49, %v2756_v63  ;;  %v1665_v36 = vpop.f32.mrb[97].mxu1 }
 0x83c   :  { %v1728_v60 = vadd.f32 %v1665_v36, %v2744_v31  ;;  %v2157_v1 = vpop.f32.mrb[98].mxu1 }
 0x83d   :  { %v1753_v5 = vadd.f32 %v2891_v17, %v1730_v56  ;;  %v1731_v0 = vadd.f32 %v2157_v1, %v2762_v45  ;;  %v1668_v14 = vpop.f32.mrb[99].mxu1 }
 0x83e   :  { %v1751_v9 = vadd.f32 %v2891_v17, %v1728_v60  ;;  %v1729_v13 = vadd.f32 %v1668_v14, %v2750_v39 }
 0x83f   :  { %1769 = vst [vmem:[#allocation10 + $0x10] sm:$0xff] %v1753_v5  ;;  %v1754_v51 = vadd.f32 %v2891_v17, %v1731_v0 }
 0x840   :  { %1767 = vst [vmem:[#allocation10] sm:$0xff] %v1751_v9  ;;  %v1752_v41 = vadd.f32 %v2891_v17, %v1729_v13 }
 0x841   :  { %1770 = vst [vmem:[#allocation10 + $0x18] sm:$0xff] %v1754_v51 }
 0x842   :  { %1768 = vst [vmem:[#allocation10 + $0x8] sm:$0xff] %v1752_v41  ;;  %v2160_v63 = vpop.f32.mrb[100].mxu1 }
 0x843   :  { %v1734_v31 = vadd.f32 %v2160_v63, %v2780_v61  ;;  %v1681_v30 = vpop.f32.mrb[101].mxu1 }
 0x844   :  { %v1732_v15 = vadd.f32 %v1681_v30, %v2768_v2  ;;  %v2161_v45 = vpop.f32.mrb[102].mxu1 }
 0x845   :  { %v1757_v52 = vadd.f32 %v2891_v17, %v1734_v31  ;;  %v1735_v21 = vadd.f32 %v2161_v45, %v2786_v28  ;;  %v1684_v39 = vpop.f32.mrb[103].mxu1 }
 0x846   :  { %v1755_v7 = vadd.f32 %v2891_v17, %v1732_v15  ;;  %v1733_v35 = vadd.f32 %v1684_v39, %v2774_v12 }
 0x847   :  { %1773 = vst [vmem:[#allocation10 + $0x30] sm:$0xff] %v1757_v52  ;;  %v1758_v43 = vadd.f32 %v2891_v17, %v1735_v21 }
 0x848   :  { %1771 = vst [vmem:[#allocation10 + $0x20] sm:$0xff] %v1755_v7  ;;  %v1756_v50 = vadd.f32 %v2891_v17, %v1733_v35 }
 0x849   :  { %1774 = vst [vmem:[#allocation10 + $0x38] sm:$0xff] %v1758_v43 }
 0x84a   :  { %1772 = vst [vmem:[#allocation10 + $0x28] sm:$0xff] %v1756_v50  ;;  %v2164_v61 = vpop.f32.mrb[104].mxu1 }
 0x84b   :  { %v1738_v2 = vadd.f32 %v2164_v61, %v2804_v34  ;;  %v1697_v27 = vpop.f32.mrb[105].mxu1 }
 0x84c   :  { %v1736_v8 = vadd.f32 %v1697_v27, %v2792_v3  ;;  %v2165_v28 = vpop.f32.mrb[106].mxu1  ;;  %v2969_v3 = vld [vmem:[#allocation21_spill] sm:$0xff] }
 0x84d   :  { %v1761_v47 = vadd.f32 %v2891_v17, %v1738_v2  ;;  %v1739_v20 = vadd.f32 %v2165_v28, %v2810_v23  ;;  %v1700_v12 = vpop.f32.mrb[107].mxu1 }
 0x84e   :  { %v1759_v57 = vadd.f32 %v2891_v17, %v1736_v8  ;;  %v1737_v53 = vadd.f32 %v1700_v12, %v2968_v22 }
 0x84f   :  { %1777 = vst [vmem:[#allocation10 + $0x50] sm:$0xff] %v1761_v47  ;;  %v1762_v4 = vadd.f32 %v2891_v17, %v1739_v20 }
 0x850   :  { %1775 = vst [vmem:[#allocation10 + $0x40] sm:$0xff] %v1759_v57  ;;  %v1760_v44 = vadd.f32 %v2891_v17, %v1737_v53 }
 0x851   :  { %1778 = vst [vmem:[#allocation10 + $0x58] sm:$0xff] %v1762_v4 }
 0x852   :  { %1776 = vst [vmem:[#allocation10 + $0x48] sm:$0xff] %v1760_v44  ;;  %v2168_v34 = vpop.f32.mrb[108].mxu1 }
 0x853   :  { %v1742_v54 = vadd.f32 %v2168_v34, %v2969_v3  ;;  %v1713_v42 = vpop.f32.mrb[109].mxu1 }
 0x854   :  { %v1740_v58 = vadd.f32 %v1713_v42, %v2970_v59  ;;  %v2169_v23 = vpop.f32.mrb[110].mxu1 }
 0x855   :  { %v1765_v32 = vadd.f32 %v2891_v17, %v1742_v54  ;;  %v1743_v25 = vadd.f32 %v2169_v23, %v2971_v26  ;;  %v1716_v46 = vpop.f32.mrb[111].mxu1 }
 0x856   :  { %v1763_v24 = vadd.f32 %v2891_v17, %v1740_v58  ;;  %v1741_v40 = vadd.f32 %v1716_v46, %v2972_v48 }
 0x857   :  { %1781 = vst [vmem:[#allocation10 + $0x70] sm:$0xff] %v1765_v32  ;;  %v1766_v6 = vadd.f32 %v2891_v17, %v1743_v25 }
 0x858   :  { %1779 = vst [vmem:[#allocation10 + $0x60] sm:$0xff] %v1763_v24  ;;  %v1764_v16 = vadd.f32 %v2891_v17, %v1741_v40 }
 0x859   :  { %1782 = vst [vmem:[#allocation10 + $0x78] sm:$0xff] %v1766_v6 }
 0x85a   :  { %1780 = vst [vmem:[#allocation10 + $0x68] sm:$0xff] %v1764_v16 }
 0x85b   :  { %2385 = shalt.err (!%p2382_p8)
}
 0x85c   :  { %s2386_s27 = scalar_lea.hbm %s2943_s6, 2048 }
 0x85d   :  { %p2387_p9 = scmp.ne.s32.totalorder %s2943_s6, %s2386_s27  ;;  %p2390_p10 = scmp.lt.u32.totalorder %s2386_s27, %s2943_s6 }
 0x85f   :  { %p2392_p11 = pnand %p2390_p10, %p2387_p9 }
 0x861   :  { %2395 = shalt.err (!%p2392_p11)
}
 0x862   :  { %s2414_s10 = smov 128   ;;  %s2415_s11 = smov 8  }
 0x863   :  { %1794 = dma.vmem_to_hbm [thread:$0]  %s1789_s23, 2048, %s2943_s6, [#allocation6], %s2414_s10, %s2414_s10, %s2415_s11  }
 0x864   :  { %2402 = dma.done.wait [#allocation6], 2048  }
 0x865   :  { %2403 = vsyncadd [#allocation6], 4294965248 }
 0x866   :  { %1798 = vsyncpa [#allocation5], 1 }
 0x867   :  { %1799 = vsyncpa [#allocation8], 1 }
 0x868   :  { %1800 = vsyncpa [#allocation6], 1 }
 0x869   :  { %1801 = vsyncmov [#allocation3] }
 0x86c   :  { %s1802_s4 = vpop.sfrf %1801 }
 0x86d   :  { %p1881_p12 = scmp.ne.s32.totalorder %s1802_s4, 0 }
 0x86f   :  { %1806 = shalt.err (%p1881_p12)  }

</bundles_post_ra>
